<compile_context>
chip_gen: v5e
topology: v5e:2x2
jax: 0.10.0
libtpu: 0.0.40
codegen_flags: <defaults>
</compile_context>

<pallas_src>
import jax
import jax.numpy as jnp
from jax.experimental import pallas as pl
from jax.experimental.pallas import tpu as pltpu


def _mlp_kernel(x_ref,
                w1_ref, b1_ref,
                w2_ref, b2_ref,
                w3_ref, b3_ref,
                w4_ref, b4_ref,
                o_ref):
    # Feature-major: activations are (features, TM), batch on the lane axis.
    x = x_ref[...]                                             # (58, TM) bf16

    # Layer 1: (400,58) @ (58,TM) + (400,1) -> ReLU   (bf16 operands, f32 acc)
    h = jnp.dot(w1_ref[...], x, preferred_element_type=jnp.float32)
    h = jnp.maximum(h + b1_ref[...], 0.0).astype(jnp.bfloat16)
    # Dropout(0.2): identity at inference time.

    # Layer 2: (200,400) @ (400,TM) + (200,1) -> ReLU
    h = jnp.dot(w2_ref[...], h, preferred_element_type=jnp.float32)
    h = jnp.maximum(h + b2_ref[...], 0.0).astype(jnp.bfloat16)

    # Layer 3: (50,200) @ (200,TM) + (50,1) -> ReLU
    h = jnp.dot(w3_ref[...], h, preferred_element_type=jnp.float32)
    h = jnp.maximum(h + b3_ref[...], 0.0).astype(jnp.bfloat16)

    # Layer 4: (4,50) @ (50,TM) + (4,1) -> Sigmoid (f32), lane-dense store.
    logits = jnp.dot(w4_ref[...], h, preferred_element_type=jnp.float32)
    logits = logits + b4_ref[...]
    o_ref[...] = jax.nn.sigmoid(logits).astype(o_ref.dtype)
    # TODO(synk): if downstream tolerates bf16 outputs, switch o_ref to bf16
    # to halve output store traffic (minor once the store is lane-dense).


def net_forward(x, params, *, tm=1024):
    """x: (B, ...) -> flattened to (B, 58). Returns (B, 4) f32 sigmoid outputs."""
    B = x.shape[0]
    x2d = x.reshape(B, -1)                       # nn.Flatten()
    assert x2d.shape[1] == 58, f"expected 58 input features, got {x2d.shape[1]}"
    # Feature-major input (58, B): batch on the lane axis. Layout plumbing only.
    xT = x2d.astype(jnp.bfloat16).T

    # Batch tile: lane-aligned (multiple of 128), capped at `tm`, and for large
    # batches chosen so the parallel grid axis has >= 2 steps (v7x has 2 TCs).
    if B <= 256:
        TM = B                                   # one full-array block
    else:
        TM = min(max(128, (tm // 128) * 128),
                 max(128, (B // 2 // 128) * 128))
    grid = (pl.cdiv(B, TM),)                     # partial last block -> masked

    args = (xT,
            params["w1"], params["b1"],
            params["w2"], params["b2"],
            params["w3"], params["b3"],
            params["w4"], params["b4"])

    # Weights/biases: full-array blocks with constant index_map -> pinned in
    # VMEM across all batch tiles (no per-step re-DMA).
    def pinned_spec(a):
        return pl.BlockSpec(a.shape, lambda i, _nd=a.ndim: (0,) * _nd)

    in_specs = [pl.BlockSpec((58, TM), lambda i: (0, i))] + \
               [pinned_spec(a) for a in args[1:]]
    out_spec = pl.BlockSpec((4, TM), lambda i: (0, i))

    out = pl.pallas_call(
        _mlp_kernel,
        out_shape=jax.ShapeDtypeStruct((4, B), jnp.float32),
        grid=grid,
        in_specs=in_specs,
        out_specs=out_spec,
        compiler_params=pltpu.CompilerParams(
            dimension_semantics=("parallel",)),   # shard batch tiles over TCs
    )(*args)
    return out.T                                  # back to (B, 4)


def init_params(key):
    """Deterministic init mimicking nn.Linear default (uniform +-1/sqrt(fan_in)).

    Weights stored PyTorch-style (out, in) in bf16 (MXU-native); biases kept
    (out, 1) f32 so they broadcast over the lane (batch) axis in the kernel.
    """
    dims = [(58, 400), (400, 200), (200, 50), (50, 4)]
    params = {}
    for idx, (fan_in, fan_out) in enumerate(dims, start=1):
        key, kw, kb = jax.random.split(key, 3)
        bound = 1.0 / (float(fan_in) ** 0.5)
        w = jax.random.uniform(kw, (fan_out, fan_in), jnp.float32, -bound, bound)
        b = jax.random.uniform(kb, (fan_out, 1), jnp.float32, -bound, bound)
        params[f"w{idx}"] = w.astype(jnp.bfloat16)
        params[f"b{idx}"] = b                      # bias added in f32 after dot
    return params


def _reference(x, params):
    """Pure-JAX f32 reference (same bf16 weight values, f32 everywhere else)."""
    h = x.reshape(x.shape[0], -1).astype(jnp.float32)
    for i in range(1, 5):
        w = params[f"w{i}"].astype(jnp.float32)    # (out, in)
        b = params[f"b{i}"][:, 0]                  # (out,)
        h = h @ w.T + b
        if i < 4:
            h = jnp.maximum(h, 0.0)
    return jax.nn.sigmoid(h)


if __name__ == "__main__":
    key = jax.random.PRNGKey(0)
    kp, kx1, kx2 = jax.random.split(key, 3)
    params = init_params(kp)

    # Small-batch path: single full-array block.
    B1 = 8
    x1 = jax.random.normal(kx1, (B1, 58), dtype=jnp.float32)
    out1 = jax.block_until_ready(net_forward(x1, params))
    assert out1.shape == (B1, 4) and out1.dtype == jnp.float32

    # Multi-step path with a partial last block (exercises masked stores).
    B2 = 300
    x2 = jax.random.normal(kx2, (B2, 58), dtype=jnp.float32)
    out2 = jax.block_until_ready(net_forward(x2, params, tm=128))
    assert out2.shape == (B2, 4)

    ref1 = _reference(x1, params)
    ref2 = _reference(x2, params)
    assert bool(jnp.allclose(out1, ref1, atol=3e-2)), \
        float(jnp.max(jnp.abs(out1 - ref1)))
    assert bool(jnp.allclose(out2, ref2, atol=3e-2)), \
        float(jnp.max(jnp.abs(out2 - ref2)))
    assert bool(jnp.all((out1 >= 0.0) & (out1 <= 1.0)))
    assert bool(jnp.all((out2 >= 0.0) & (out2 <= 1.0)))
    print("KERNEL_OK")
</pallas_src>

<mosaic_0001>
module attributes {stable_mosaic.version = 11 : i64} {
  func.func @_mlp_kernel(%arg0: i32, %arg1: memref<58x8xbf16, #tpu.memory_space<vmem>>, %arg2: memref<400x58xbf16, #tpu.memory_space<vmem>>, %arg3: memref<400x1xf32, #tpu.memory_space<vmem>>, %arg4: memref<200x400xbf16, #tpu.memory_space<vmem>>, %arg5: memref<200x1xf32, #tpu.memory_space<vmem>>, %arg6: memref<50x200xbf16, #tpu.memory_space<vmem>>, %arg7: memref<50x1xf32, #tpu.memory_space<vmem>>, %arg8: memref<4x50xbf16, #tpu.memory_space<vmem>>, %arg9: memref<4x1xf32, #tpu.memory_space<vmem>>, %arg10: memref<4x8xf32, #tpu.memory_space<vmem>>) attributes {dimension_semantics = [#tpu.dimension_semantics<parallel>], iteration_bounds = array<i64: 1>, scalar_prefetch = 0 : i64, scratch_operands = 0 : i64, tpu.core_type = #tpu.core_type<tc>, window_params = [{transform_indices = @transform_0, window_bounds = array<i64: 58, 8>}, {pipeline_mode = #tpu.pipeline_mode<synchronous>, transform_indices = @transform_1, window_bounds = array<i64: 400, 58>}, {pipeline_mode = #tpu.pipeline_mode<synchronous>, transform_indices = @transform_2, window_bounds = array<i64: 400, 1>}, {pipeline_mode = #tpu.pipeline_mode<synchronous>, transform_indices = @transform_3, window_bounds = array<i64: 200, 400>}, {pipeline_mode = #tpu.pipeline_mode<synchronous>, transform_indices = @transform_4, window_bounds = array<i64: 200, 1>}, {pipeline_mode = #tpu.pipeline_mode<synchronous>, transform_indices = @transform_5, window_bounds = array<i64: 50, 200>}, {pipeline_mode = #tpu.pipeline_mode<synchronous>, transform_indices = @transform_6, window_bounds = array<i64: 50, 1>}, {pipeline_mode = #tpu.pipeline_mode<synchronous>, transform_indices = @transform_7, window_bounds = array<i64: 4, 50>}, {pipeline_mode = #tpu.pipeline_mode<synchronous>, transform_indices = @transform_8, window_bounds = array<i64: 4, 1>}, {transform_indices = @transform_9, window_bounds = array<i64: 4, 8>}]} {
    %c0 = arith.constant 0 : index
    %c0_0 = arith.constant 0 : index
    %0 = vector.load %arg1[%c0, %c0_0] : memref<58x8xbf16, #tpu.memory_space<vmem>>, vector<58x8xbf16>
    %c0_1 = arith.constant 0 : index
    %c0_2 = arith.constant 0 : index
    %1 = vector.load %arg2[%c0_1, %c0_2] : memref<400x58xbf16, #tpu.memory_space<vmem>>, vector<400x58xbf16>
    %cst = arith.constant dense<0.000000e+00> : vector<400x8xf32>
    %2 = tpu.matmul %1, %0, %cst {dimension_numbers = #tpu.dot_dimension_numbers<[1], [0], [0], [1], [0, 0, 1, 1], [], []>} : vector<400x58xbf16>, vector<58x8xbf16>, vector<400x8xf32> -> vector<400x8xf32>
    %c0_3 = arith.constant 0 : index
    %c0_4 = arith.constant 0 : index
    %3 = vector.load %arg3[%c0_3, %c0_4] : memref<400x1xf32, #tpu.memory_space<vmem>>, vector<400x1xf32>
    %4 = vector.broadcast %3 : vector<400x1xf32> to vector<400x8xf32>
    %5 = arith.addf %2, %4 : vector<400x8xf32>
    %cst_5 = arith.constant 0.000000e+00 : f32
    %6 = vector.broadcast %cst_5 : f32 to vector<400x8xf32>
    %7 = arith.maximumf %5, %6 : vector<400x8xf32>
    %8 = arith.truncf %7 : vector<400x8xf32> to vector<400x8xbf16>
    %c0_6 = arith.constant 0 : index
    %c0_7 = arith.constant 0 : index
    %9 = vector.load %arg4[%c0_6, %c0_7] : memref<200x400xbf16, #tpu.memory_space<vmem>>, vector<200x400xbf16>
    %cst_8 = arith.constant dense<0.000000e+00> : vector<200x8xf32>
    %10 = tpu.matmul %9, %8, %cst_8 {dimension_numbers = #tpu.dot_dimension_numbers<[1], [0], [0], [1], [0, 0, 1, 1], [], []>} : vector<200x400xbf16>, vector<400x8xbf16>, vector<200x8xf32> -> vector<200x8xf32>
    %c0_9 = arith.constant 0 : index
    %c0_10 = arith.constant 0 : index
    %11 = vector.load %arg5[%c0_9, %c0_10] : memref<200x1xf32, #tpu.memory_space<vmem>>, vector<200x1xf32>
    %12 = vector.broadcast %11 : vector<200x1xf32> to vector<200x8xf32>
    %13 = arith.addf %10, %12 : vector<200x8xf32>
    %cst_11 = arith.constant 0.000000e+00 : f32
    %14 = vector.broadcast %cst_11 : f32 to vector<200x8xf32>
    %15 = arith.maximumf %13, %14 : vector<200x8xf32>
    %16 = arith.truncf %15 : vector<200x8xf32> to vector<200x8xbf16>
    %c0_12 = arith.constant 0 : index
    %c0_13 = arith.constant 0 : index
    %17 = vector.load %arg6[%c0_12, %c0_13] : memref<50x200xbf16, #tpu.memory_space<vmem>>, vector<50x200xbf16>
    %cst_14 = arith.constant dense<0.000000e+00> : vector<50x8xf32>
    %18 = tpu.matmul %17, %16, %cst_14 {dimension_numbers = #tpu.dot_dimension_numbers<[1], [0], [0], [1], [0, 0, 1, 1], [], []>} : vector<50x200xbf16>, vector<200x8xbf16>, vector<50x8xf32> -> vector<50x8xf32>
    %c0_15 = arith.constant 0 : index
    %c0_16 = arith.constant 0 : index
    %19 = vector.load %arg7[%c0_15, %c0_16] : memref<50x1xf32, #tpu.memory_space<vmem>>, vector<50x1xf32>
    %20 = vector.broadcast %19 : vector<50x1xf32> to vector<50x8xf32>
    %21 = arith.addf %18, %20 : vector<50x8xf32>
    %cst_17 = arith.constant 0.000000e+00 : f32
    %22 = vector.broadcast %cst_17 : f32 to vector<50x8xf32>
    %23 = arith.maximumf %21, %22 : vector<50x8xf32>
    %24 = arith.truncf %23 : vector<50x8xf32> to vector<50x8xbf16>
    %c0_18 = arith.constant 0 : index
    %c0_19 = arith.constant 0 : index
    %25 = vector.load %arg8[%c0_18, %c0_19] : memref<4x50xbf16, #tpu.memory_space<vmem>>, vector<4x50xbf16>
    %cst_20 = arith.constant dense<0.000000e+00> : vector<4x8xf32>
    %26 = tpu.matmul %25, %24, %cst_20 {dimension_numbers = #tpu.dot_dimension_numbers<[1], [0], [0], [1], [0, 0, 1, 1], [], []>} : vector<4x50xbf16>, vector<50x8xbf16>, vector<4x8xf32> -> vector<4x8xf32>
    %c0_21 = arith.constant 0 : index
    %c0_22 = arith.constant 0 : index
    %27 = vector.load %arg9[%c0_21, %c0_22] : memref<4x1xf32, #tpu.memory_space<vmem>>, vector<4x1xf32>
    %28 = vector.broadcast %27 : vector<4x1xf32> to vector<4x8xf32>
    %29 = arith.addf %26, %28 : vector<4x8xf32>
    %30 = arith.negf %29 : vector<4x8xf32>
    %31 = math.exp %30 : vector<4x8xf32>
    %cst_23 = arith.constant 1.000000e+00 : f32
    %32 = vector.broadcast %cst_23 : f32 to vector<4x8xf32>
    %33 = arith.addf %32, %31 : vector<4x8xf32>
    %34 = arith.divf %32, %33 : vector<4x8xf32>
    %c0_24 = arith.constant 0 : index
    %c0_25 = arith.constant 0 : index
    %35 = vector.load %arg10[%c0_24, %c0_25] : memref<4x8xf32, #tpu.memory_space<vmem>>, vector<4x8xf32>
    tpu.vector_store %arg10[%c0_24, %c0_25], %34 {strides = array<i32>} : memref<4x8xf32, #tpu.memory_space<vmem>>, vector<4x8xf32>,
    return
  }
  func.func @transform_0(%arg0: i32) -> (i32, i32) {
    %c0_i32 = arith.constant 0 : i32
    %c0_i32_0 = arith.constant 0 : i32
    return %c0_i32, %arg0 : i32, i32
  }
  func.func @transform_1(%arg0: i32) -> (i32, i32) {
    %c0_i32 = arith.constant 0 : i32
    %c0_i32_0 = arith.constant 0 : i32
    %c0_i32_1 = arith.constant 0 : i32
    return %c0_i32, %c0_i32_0 : i32, i32
  }
  func.func @transform_2(%arg0: i32) -> (i32, i32) {
    %c0_i32 = arith.constant 0 : i32
    %c0_i32_0 = arith.constant 0 : i32
    %c0_i32_1 = arith.constant 0 : i32
    return %c0_i32, %c0_i32_0 : i32, i32
  }
  func.func @transform_3(%arg0: i32) -> (i32, i32) {
    %c0_i32 = arith.constant 0 : i32
    %c0_i32_0 = arith.constant 0 : i32
    %c0_i32_1 = arith.constant 0 : i32
    return %c0_i32, %c0_i32_0 : i32, i32
  }
  func.func @transform_4(%arg0: i32) -> (i32, i32) {
    %c0_i32 = arith.constant 0 : i32
    %c0_i32_0 = arith.constant 0 : i32
    %c0_i32_1 = arith.constant 0 : i32
    return %c0_i32, %c0_i32_0 : i32, i32
  }
  func.func @transform_5(%arg0: i32) -> (i32, i32) {
    %c0_i32 = arith.constant 0 : i32
    %c0_i32_0 = arith.constant 0 : i32
    %c0_i32_1 = arith.constant 0 : i32
    return %c0_i32, %c0_i32_0 : i32, i32
  }
  func.func @transform_6(%arg0: i32) -> (i32, i32) {
    %c0_i32 = arith.constant 0 : i32
    %c0_i32_0 = arith.constant 0 : i32
    %c0_i32_1 = arith.constant 0 : i32
    return %c0_i32, %c0_i32_0 : i32, i32
  }
  func.func @transform_7(%arg0: i32) -> (i32, i32) {
    %c0_i32 = arith.constant 0 : i32
    %c0_i32_0 = arith.constant 0 : i32
    %c0_i32_1 = arith.constant 0 : i32
    return %c0_i32, %c0_i32_0 : i32, i32
  }
  func.func @transform_8(%arg0: i32) -> (i32, i32) {
    %c0_i32 = arith.constant 0 : i32
    %c0_i32_0 = arith.constant 0 : i32
    %c0_i32_1 = arith.constant 0 : i32
    return %c0_i32, %c0_i32_0 : i32, i32
  }
  func.func @transform_9(%arg0: i32) -> (i32, i32) {
    %c0_i32 = arith.constant 0 : i32
    %c0_i32_0 = arith.constant 0 : i32
    return %c0_i32, %arg0 : i32, i32
  }
}

</mosaic_0001>

<bundles_post_ra>
// kernel: tpu_custom_call.1
= control target key start
LH: loop header
LB: loop body
LE: loop exit
PB: predicated region body
PF: predicated region fallthrough
CT: control target
= control target key end

     0   :  { %v2377_v3 = vmov 0   ;;  %vm616_vm0 = vcmask 1044480   ;;  %s3531_s0 = inlined_call_operand.vmem [shape: bf16[58,8], index: 0, kind: input, shape index: {}]   ;;  %s3532_s1 = inlined_call_operand.vmem [shape: bf16[400,58], index: 1, kind: input, shape index: {}]   ;;  %s3533_s2 = inlined_call_operand.vmem [shape: f32[400,1], index: 2, kind: input, shape index: {}]   ;;  %s3534_s3 = inlined_call_operand.vmem [shape: bf16[200,400], index: 3, kind: input, shape index: {}]   ;;  %s3535_s4 = inlined_call_operand.vmem [shape: f32[200,1], index: 4, kind: input, shape index: {}]   ;;  %s3536_s5 = inlined_call_operand.vmem [shape: bf16[50,200], index: 5, kind: input, shape index: {}]   ;;  %s3537_s6 = inlined_call_operand.vmem [shape: f32[50,1], index: 6, kind: input, shape index: {}]   ;;  %s3538_s7 = inlined_call_operand.vmem [shape: bf16[4,50], index: 7, kind: input, shape index: {}]   ;;  %s3539_s8 = inlined_call_operand.vmem [shape: f32[4,1], index: 8, kind: input, shape index: {}]   ;;  %s3540_s9 = inlined_call_operand.hbm [shape: f32[4,8], index: 9, kind: output, shape index: {}]  }
   0x1   :  { %v106_v0 = vld [vmem:[%s3533_s2 + $0x70] sm:$0xff]  ;;  %v1985_v1 = vld [vmem:[%s3531_s0 + $0x18] sm:$0xf]  ;;  %v2250_v2 = vld [vmem:[%s3531_s0 + $0x18] sm:$0x10]  ;;  %2344 = vset.pattern.permute.xlu0 %v2377_v3  ;;  %2345 = vset.pattern.permute.xlu1 %v2377_v3 }
   0x2   :  { %v1986_v4 = vor.u32 %v2250_v2, %v1985_v1  ;;  %v104_v5 = vld [vmem:[%s3533_s2 + $0x60] sm:$0xff]  ;;  %214 = vperm.xlu0 %2344, %v106_v0   ;;  %2346 = vset.pattern.permute.xlu2 %v2377_v3  ;;  %v102_v7 = vld [vmem:[%s3533_s2 + $0x50] sm:$0xff]  ;;  %v107_v9 = vld [vmem:[%s3533_s2 + $0x78] sm:$0xff] }
   0x3   :  { %204 = vperm.xlu1 %2345, %v104_v5   ;;  %v2249_v8 = vld [vmem:[%s3531_s0 + $0x10] sm:$0xff]  ;;  %194 = vperm.xlu2 %2346, %v102_v7   ;;  %v105_v10 = vld [vmem:[%s3533_s2 + $0x68] sm:$0xff] }
   0x4   :  { %v618_v6 = vsel %vm616_vm0, %v1986_v4, 0 }
   0x5   :  { %624 = vmatpush.bf16.msra.mxu0 %v618_v6  ;;  %2330 = vmatpush.bf16.msra.mxu2 %v618_v6 }
   0x6   :  { %14 = vsyncpa [#allocation3], 0  ;;  %v2248_v11 = vld [vmem:[%s3531_s0 + $0x8] sm:$0xff]  ;;  %v103_v12 = vld [vmem:[%s3533_s2 + $0x58] sm:$0xff]  ;;  %vm540_vm1 = vcmask 474112   ;;  %vm1270_vm2 = vcmask 130048  }
   0x7   :  { %v2247_v13 = vld [vmem:[%s3531_s0] sm:$0xff]  ;;  %v101_v16 = vld [vmem:[%s3533_s2 + $0x48] sm:$0xff]  ;;  %v98_v17 = vld [vmem:[%s3533_s2 + $0x30] sm:$0xff]  ;;  %vm1735_vm3 = vcmask 1043456   ;;  %vm1722_vm4 = vcmask 588800   ;;  %vm1817_vm5 = vcmask 1040384  }
   0x8   :  { %v100_v14 = vld [vmem:[%s3533_s2 + $0x40] sm:$0xff]  ;;  %v99_v18 = vld [vmem:[%s3533_s2 + $0x38] sm:$0xff]  ;;  %v97_v20 = vld [vmem:[%s3533_s2 + $0x28] sm:$0xff]  ;;  %vm1813_vm6 = vcmask 408576   ;;  %s2378_s14 = smov [#allocation2]   ;;  %s1862_s16 = sshll.u32 %s3540_s9, 4  ;;  %s1863_s16 = int_to_ptr.hbm [resolvable:$true] %s1862_s16 }
   0x9   :  { %625 = vmatpush.bf16.msra.mxu0 %v2249_v8  ;;  %2331 = vmatpush.bf16.msra.mxu2 %v2249_v8  ;;  %v2251_v15 = vld [vmem:[%s3532_s1] sm:$0xff]  ;;  %v94_v21 = vld [vmem:[%s3533_s2 + $0x10] sm:$0xff]  ;;  %v2252_v22 = vld [vmem:[%s3532_s1 + $0x8] sm:$0xff]  ;;  %vm1853_vm10 = vcmask 60416  }
   0xa   :  { %219 = vperm.xlu0 %2344, %v107_v9   ;;  %v96_v19 = vld [vmem:[%s3533_s2 + $0x20] sm:$0xff]  ;;  %v95_v23 = vld [vmem:[%s3533_s2 + $0x18] sm:$0xff]  ;;  %v93_v25 = vld [vmem:[%s3533_s2 + $0x8] sm:$0xff] }
   0xb   :  { %209 = vperm.xlu1 %2345, %v105_v10   ;;  %199 = vperm.xlu2 %2346, %v103_v12   ;;  %v92_v24 = vld [vmem:[%s3533_s2] sm:$0xff]  ;;  %v122_v26 = vld [vmem:[%s3533_s2 + $0xf0] sm:$0xff]  ;;  %v139_v29 = vld [vmem:[%s3533_s2 + $0x178] sm:$0xff] }
   0xc   :  { %v138_v27 = vld [vmem:[%s3533_s2 + $0x170] sm:$0xff]  ;;  %v123_v30 = vld [vmem:[%s3533_s2 + $0xf8] sm:$0xff]  ;;  %v121_v31 = vld [vmem:[%s3533_s2 + $0xe8] sm:$0xff] }
   0xd   :  { %626 = vmatpush.bf16.msra.mxu0 %v2248_v11  ;;  %2332 = vmatpush.bf16.msra.mxu2 %v2248_v11  ;;  %v2253_v28 = vld [vmem:[%s3532_s1 + $0x10] sm:$0xff]  ;;  %v136_v32 = vld [vmem:[%s3533_s2 + $0x160] sm:$0xff]  ;;  %v2254_v35 = vld [vmem:[%s3532_s1 + $0x18] sm:$0xff] }
   0xe   :  { %v120_v33 = vld [vmem:[%s3533_s2 + $0xe0] sm:$0xff]  ;;  %v118_v34 = vld [vmem:[%s3533_s2 + $0xd0] sm:$0xff]  ;;  %v119_v36 = vld [vmem:[%s3533_s2 + $0xd8] sm:$0xff] }
   0xf   :  { %v137_v37 = vld [vmem:[%s3533_s2 + $0x168] sm:$0xff]  ;;  %v135_v38 = vld [vmem:[%s3533_s2 + $0x158] sm:$0xff]  ;;  %v116_v39 = vld [vmem:[%s3533_s2 + $0xc0] sm:$0xff] }
  0x10   :  { %v134_v40 = vld [vmem:[%s3533_s2 + $0x150] sm:$0xff]  ;;  %v132_v41 = vld [vmem:[%s3533_s2 + $0x140] sm:$0xff]  ;;  %v133_v43 = vld [vmem:[%s3533_s2 + $0x148] sm:$0xff] }
  0x11   :  { %627 = vmatpush.bf16.msra.mxu0 %v2247_v13  ;;  %2333 = vmatpush.bf16.msra.mxu2 %v2247_v13  ;;  %v2255_v42 = vld [vmem:[%s3532_s1 + $0x20] sm:$0xff]  ;;  %v117_v44 = vld [vmem:[%s3533_s2 + $0xc8] sm:$0xff]  ;;  %v115_v45 = vld [vmem:[%s3533_s2 + $0xb8] sm:$0xff] }
  0x12   :  { %184 = vperm.xlu0 %2344, %v100_v14   ;;  %v130_v46 = vld [vmem:[%s3533_s2 + $0x130] sm:$0xff]  ;;  %v112_v48 = vld [vmem:[%s3533_s2 + $0xa0] sm:$0xff]  ;;  %v2256_v49 = vld [vmem:[%s3532_s1 + $0x28] sm:$0xff] }
  0x13   :  { %189 = vperm.xlu1 %2345, %v101_v16   ;;  %174 = vperm.xlu2 %2346, %v98_v17   ;;  %v114_v47 = vld [vmem:[%s3533_s2 + $0xb0] sm:$0xff]  ;;  %v113_v50 = vld [vmem:[%s3533_s2 + $0xa8] sm:$0xff]  ;;  %v131_v51 = vld [vmem:[%s3533_s2 + $0x138] sm:$0xff] }
  0x14   :  { %1987 = vmatmul.msk.bf16.vlgmr.msra.gmra.mxu0 %vm540_vm1, %v2251_v15  ;;  %v129_v52 = vld [vmem:[%s3533_s2 + $0x128] sm:$0xff]  ;;  %v110_v53 = vld [vmem:[%s3533_s2 + $0x90] sm:$0xff]  ;;  %v128_v54 = vld [vmem:[%s3533_s2 + $0x120] sm:$0xff] }
  0x15   :  { %v126_v55 = vld [vmem:[%s3533_s2 + $0x110] sm:$0xff]  ;;  %v127_v57 = vld [vmem:[%s3533_s2 + $0x118] sm:$0xff]  ;;  %v109_v61 = vld [vmem:[%s3533_s2 + $0x88] sm:$0xff] }
  0x16   :  { %v2257_v56 = vld [vmem:[%s3532_s1 + $0x30] sm:$0xff]  ;;  %v111_v59 = vld [vmem:[%s3533_s2 + $0x98] sm:$0xff]  ;;  %v124_v62 = vld [vmem:[%s3533_s2 + $0x100] sm:$0xff] }
  0x17   :  { %v108_v63 = vld [vmem:[%s3533_s2 + $0x80] sm:$0xff]  ;;  %v2258_v3 = vld [vmem:[%s3532_s1 + $0x38] sm:$0xff]  ;;  %v141_v4 = vld [vmem:[%s3533_s2 + $0x188] sm:$0xff] }
  0x18   :  { %v140_v2 = vld [vmem:[%s3533_s2 + $0x180] sm:$0xff]  ;;  %v2273_v5 = vld [vmem:[%s3532_s1 + $0xb0] sm:$0xff]  ;;  %v125_v7 = vld [vmem:[%s3533_s2 + $0x108] sm:$0xff] }
  0x19   :  { %2009 = vmatmul.msk.bf16.vlgmr.msra.gmra.mxu2 %vm540_vm1, %v2273_v5  ;;  %v894_v10 = vld [vmem:[%s3535_s4 + $0x78] sm:$0xff]  ;;  %v891_v11 = vld [vmem:[%s3535_s4 + $0x60] sm:$0xff]  ;;  %v893_v12 = vld [vmem:[%s3535_s4 + $0x70] sm:$0xff] }
  0x1a   :  { %179 = vperm.xlu0 %2344, %v99_v18   ;;  %v889_v16 = vld [vmem:[%s3535_s4 + $0x50] sm:$0xff]  ;;  %v2259_v17 = vld [vmem:[%s3532_s1 + $0x40] sm:$0xff]  ;;  %v890_v18 = vld [vmem:[%s3535_s4 + $0x58] sm:$0xff] }
  0x1b   :  { %164 = vperm.xlu1 %2345, %v96_v19   ;;  %169 = vperm.xlu2 %2346, %v97_v20   ;;  %v2274_v19 = vld [vmem:[%s3532_s1 + $0xb8] sm:$0xff] }
  0x22   :  { %154 = vperm.xlu0 %2344, %v94_v21   ;;  %v892_v21 = vld [vmem:[%s3535_s4 + $0x68] sm:$0xff] }
  0x23   :  { %159 = vperm.xlu1 %2345, %v95_v23   ;;  %144 = vperm.xlu2 %2346, %v92_v24   ;;  %v888_v24 = vld [vmem:[%s3535_s4 + $0x48] sm:$0xff] }
  0x24   :  { %1988 = vmatmul.msk.bf16.gmra.mxu0 %vm540_vm1, %v2252_v22 }
  0x29   :  { %2010 = vmatmul.msk.bf16.gmra.mxu2 %vm540_vm1, %v2274_v19 }
  0x2a   :  { %149 = vperm.xlu0 %2344, %v93_v25   ;;  %v903_v25 = vld [vmem:[%s3535_s4 + $0xc0] sm:$0xff] }
  0x2b   :  { %294 = vperm.xlu1 %2345, %v122_v26   ;;  %299 = vperm.xlu2 %2346, %v123_v30  }
  0x32   :  { %374 = vperm.xlu0 %2344, %v138_v27  }
  0x33   :  { %379 = vperm.xlu1 %2345, %v139_v29   ;;  %284 = vperm.xlu2 %2346, %v120_v33   ;;  %v886_v33 = vld [vmem:[%s3535_s4 + $0x38] sm:$0xff] }
  0x34   :  { %1989 = vmatmul.msk.bf16.gmra.mxu0 %vm540_vm1, %v2253_v28  ;;  %v887_v28 = vld [vmem:[%s3535_s4 + $0x40] sm:$0xff] }
  0x3a   :  { %289 = vperm.xlu0 %2344, %v121_v31  }
  0x3b   :  { %364 = vperm.xlu1 %2345, %v136_v32   ;;  %369 = vperm.xlu2 %2346, %v137_v37   ;;  %v901_v37 = vld [vmem:[%s3535_s4 + $0xb0] sm:$0xff] }
  0x42   :  { %274 = vperm.xlu0 %2344, %v118_v34  }
  0x43   :  { %279 = vperm.xlu1 %2345, %v119_v36   ;;  %354 = vperm.xlu2 %2346, %v134_v40   ;;  %v2260_v36 = vld [vmem:[%s3532_s1 + $0x48] sm:$0xff] }
  0x44   :  { %1990 = vmatmul.msk.bf16.gmra.mxu0 %vm540_vm1, %v2254_v35 }
  0x4a   :  { %359 = vperm.xlu0 %2344, %v135_v38   ;;  %v2275_v38 = vld [vmem:[%s3532_s1 + $0xc0] sm:$0xff] }
  0x4b   :  { %264 = vperm.xlu1 %2345, %v116_v39   ;;  %269 = vperm.xlu2 %2346, %v117_v44   ;;  %v884_v44 = vld [vmem:[%s3535_s4 + $0x28] sm:$0xff] }
  0x4c   :  { %2011 = vmatmul.msk.bf16.gmra.mxu2 %vm540_vm1, %v2275_v38  ;;  %v1648_v38 = vld [vmem:[%s3537_s6 + $0x8] sm:$0xff] }
  0x52   :  { %344 = vperm.xlu0 %2344, %v132_v41   ;;  %v885_v41 = vld [vmem:[%s3535_s4 + $0x30] sm:$0xff] }
  0x53   :  { %349 = vperm.xlu1 %2345, %v133_v43   ;;  %254 = vperm.xlu2 %2346, %v114_v47   ;;  %v883_v43 = vld [vmem:[%s3535_s4 + $0x20] sm:$0xff] }
  0x54   :  { %1991 = vmatmul.msk.bf16.gmra.mxu0 %vm540_vm1, %v2255_v42 }
  0x5a   :  { %259 = vperm.xlu0 %2344, %v115_v45  }
  0x5b   :  { %334 = vperm.xlu1 %2345, %v130_v46   ;;  %339 = vperm.xlu2 %2346, %v131_v51  }
  0x5d   :  { %v2600_v58 = vpop.permute.xlu2 %194 }
  0x62   :  { %244 = vperm.xlu0 %2344, %v112_v48   ;;  %v902_v48 = vld [vmem:[%s3535_s4 + $0xb8] sm:$0xff] }
  0x63   :  { %249 = vperm.xlu1 %2345, %v113_v50   ;;  %324 = vperm.xlu2 %2346, %v128_v54   ;;  %v881_v54 = vld [vmem:[%s3535_s4 + $0x10] sm:$0xff] }
  0x64   :  { %1992 = vmatmul.msk.bf16.gmra.mxu0 %vm540_vm1, %v2256_v49 }
  0x65   :  { %v2617_v0 = vpop.permute.xlu2 %199 }
  0x6a   :  { %329 = vperm.xlu0 %2344, %v129_v52   ;;  %v900_v52 = vld [vmem:[%s3535_s4 + $0xa8] sm:$0xff] }
  0x6b   :  { %234 = vperm.xlu1 %2345, %v110_v53   ;;  %239 = vperm.xlu2 %2346, %v111_v59   ;;  %v2261_v53 = vld [vmem:[%s3532_s1 + $0x50] sm:$0xff] }
  0x6c   :  { %v897_v59 = vld [vmem:[%s3535_s4 + $0x90] sm:$0xff] }
  0x6d   :  { %v2640_v8 = vpop.permute.xlu2 %174 }
  0x72   :  { %314 = vperm.xlu0 %2344, %v126_v55  }
  0x73   :  { %319 = vperm.xlu1 %2345, %v127_v57   ;;  %224 = vperm.xlu2 %2346, %v108_v63   ;;  %v899_v57 = vld [vmem:[%s3535_s4 + $0xa0] sm:$0xff] }
  0x74   :  { %1993 = vmatmul.msk.bf16.gmra.mxu0 %vm540_vm1, %v2257_v56  ;;  %v2606_v60 = vpop.permute.xlu0 %214 }
  0x75   :  { %v2633_v6 = vpop.permute.xlu1 %204  ;;  %v2657_v15 = vpop.permute.xlu2 %169 }
  0x7a   :  { %229 = vperm.xlu0 %2344, %v109_v61   ;;  %v898_v61 = vld [vmem:[%s3535_s4 + $0x98] sm:$0xff] }
  0x7b   :  { %304 = vperm.xlu1 %2345, %v124_v62   ;;  %309 = vperm.xlu2 %2346, %v125_v7  }
  0x7c   :  { %v2619_v1 = vpop.permute.xlu0 %219 }
  0x7d   :  { %v2653_v13 = vpop.permute.xlu1 %209  ;;  %v145_v26 = vpop.permute.xlu2 %144 }
  0x82   :  { %384 = vperm.xlu0 %2344, %v140_v2   ;;  %v882_v2 = vld [vmem:[%s3535_s4 + $0x18] sm:$0xff] }
  0x83   :  { %389 = vperm.xlu1 %2345, %v141_v4   ;;  %976 = vperm.xlu2 %2346, %v893_v12   ;;  %v880_v12 = vld [vmem:[%s3535_s4 + $0x8] sm:$0xff] }
  0x84   :  { %1994 = vmatmul.msk.bf16.gmra.mxu0 %vm540_vm1, %v2258_v3  ;;  %v2642_v9 = vpop.permute.xlu0 %184 }
  0x85   :  { %v2676_v22 = vpop.permute.xlu1 %189  ;;  %v2740_v5 = vpop.permute.xlu2 %299 }
  0x8a   :  { %981 = vperm.xlu0 %2344, %v894_v10  }
  0x8b   :  { %966 = vperm.xlu1 %2345, %v891_v11   ;;  %971 = vperm.xlu2 %2346, %v892_v21   ;;  %v1653_v21 = vld [vmem:[%s3537_s6 + $0x30] sm:$0x3] }
  0x8c   :  { %v2655_v14 = vpop.permute.xlu0 %179 }
  0x8d   :  { %v165_v32 = vpop.permute.xlu1 %164  ;;  %v2761_v19 = vpop.permute.xlu2 %284 }
  0x91   :  { %v629_v20 = vpop.f32.mrf.mxu0 }
  0x92   :  { %956 = vperm.xlu0 %2344, %v889_v16   ;;  %v630_v29 = vadd.f32 %v629_v20, %v145_v26  ;;  %v895_v16 = vld [vmem:[%s3535_s4 + $0x80] sm:$0xff] }
  0x93   :  { %961 = vperm.xlu1 %2345, %v890_v18   ;;  %946 = vperm.xlu2 %2346, %v887_v28   ;;  %v879_v18 = vld [vmem:[%s3535_s4] sm:$0xff]  ;;  %v896_v28 = vld [vmem:[%s3535_s4 + $0x88] sm:$0xff] }
  0x94   :  { %1995 = vmatmul.msk.bf16.gmra.mxu0 %vm540_vm1, %v2259_v17  ;;  %v155_v23 = vpop.permute.xlu0 %154  ;;  %v754_v34 = vmax.f32 %v630_v29, 0.0 }
  0x95   :  { %v160_v45 = vpop.permute.xlu1 %159 }
  0x99   :  { %v631_v27 = vpop.f32.mrf.mxu0 }
  0x9a   :  { %951 = vperm.xlu0 %2344, %v888_v24  }
  0x9b   :  { %1026 = vperm.xlu1 %2345, %v903_v25   ;;  %936 = vperm.xlu2 %2346, %v885_v41   ;;  %v1647_v41 = vld [vmem:[%s3537_s6] sm:$0xff] }
  0x9c   :  { %v150_v30 = vpop.permute.xlu0 %149 }
  0x9d   :  { %v632_v31 = vadd.f32 %v631_v27, %v150_v30  ;;  %v2746_v11 = vpop.permute.xlu1 %294 }
  0x9f   :  { %v755_v35 = vmax.f32 %v632_v31, 0.0  ;;  %v1649_v31 = vld [vmem:[%s3537_s6 + $0x10] sm:$0xff] }
  0xa1   :  { %v634_v39 = vpop.f32.mrf.mxu0  ;;  %v2703_v42 = vpack.c.bf16 %v755_v35, %v754_v34  ;;  %v1652_v35 = vld [vmem:[%s3537_s6 + $0x28] sm:$0xff] }
  0xa2   :  { %v635_v40 = vadd.f32 %v634_v39, %v155_v23  ;;  %941 = vperm.xlu0 %2344, %v886_v33   ;;  %v1651_v23 = vld [vmem:[%s3537_s6 + $0x20] sm:$0xff]  ;;  %v2789_v33 = vpop.permute.xlu2 %369 }
  0xa3   :  { %1016 = vperm.xlu1 %2345, %v901_v37   ;;  %1021 = vperm.xlu2 %2346, %v902_v48   ;;  %v1807_v39 = vld [vmem:[%s3539_s8] sm:$0xf] }
  0xa4   :  { %1996 = vmatmul.msk.bf16.gmra.mxu0 %vm540_vm1, %v2260_v36  ;;  %v756_v49 = vmax.f32 %v635_v40, 0.0  ;;  %v2744_v10 = vpop.permute.xlu0 %374 }
  0xa5   :  { %v2772_v26 = vpop.permute.xlu1 %379 }
  0xa9   :  { %v636_v46 = vpop.f32.mrf.mxu0 }
  0xaa   :  { %v637_v47 = vadd.f32 %v636_v46, %v160_v45  ;;  %926 = vperm.xlu0 %2344, %v883_v43   ;;  %v2810_v43 = vpop.permute.xlu2 %354  ;;  %v2264_v46 = vld [vmem:[%s3532_s1 + $0x68] sm:$0xff] }
  0xab   :  { %931 = vperm.xlu1 %2345, %v884_v44   ;;  %1006 = vperm.xlu2 %2346, %v899_v57  }
  0xac   :  { %v757_v50 = vmax.f32 %v637_v47, 0.0  ;;  %v2770_v24 = vpop.permute.xlu0 %289 }
  0xad   :  { %v2798_v37 = vpop.permute.xlu1 %364 }
  0xae   :  { %v2715_v51 = vpack.c.bf16 %v757_v50, %v756_v49 }
  0xb1   :  { %v639_v55 = vpop.f32.mrf.mxu0 }
  0xb2   :  { %v640_v56 = vadd.f32 %v639_v55, %v165_v32  ;;  %1011 = vperm.xlu0 %2344, %v900_v52   ;;  %v2263_v32 = vld [vmem:[%s3532_s1 + $0x60] sm:$0xff]  ;;  %v2820_v48 = vpop.permute.xlu2 %269 }
  0xb3   :  { %916 = vperm.xlu1 %2345, %v881_v54   ;;  %921 = vperm.xlu2 %2346, %v882_v2   ;;  %v2265_v54 = vld [vmem:[%s3532_s1 + $0x70] sm:$0xff]  ;;  %v2266_v2 = vld [vmem:[%s3532_s1 + $0x78] sm:$0xff] }
  0xb4   :  { %1997 = vmatmul.msk.bf16.gmra.mxu0 %vm540_vm1, %v2261_v53  ;;  %v758_v3 = vmax.f32 %v640_v56, 0.0  ;;  %v2796_v36 = vpop.permute.xlu0 %274 }
  0xb5   :  { %v2814_v45 = vpop.permute.xlu1 %279 }
  0xb9   :  { %v641_v62 = vpop.f32.mrf.mxu0 }
  0xba   :  { %v642_v63 = vadd.f32 %v641_v62, %v2657_v15  ;;  %996 = vperm.xlu0 %2344, %v897_v59   ;;  %v2262_v15 = vld [vmem:[%s3532_s1 + $0x58] sm:$0xff]  ;;  %v2826_v53 = vpop.permute.xlu2 %254 }
  0xbb   :  { %1001 = vperm.xlu1 %2345, %v898_v61   ;;  %906 = vperm.xlu2 %2346, %v879_v18  }
  0xbc   :  { %v759_v4 = vmax.f32 %v642_v63, 0.0  ;;  %v2812_v44 = vpop.permute.xlu0 %359 }
  0xbd   :  { %v2824_v50 = vpop.permute.xlu1 %264 }
  0xbe   :  { %v2742_v7 = vpack.c.bf16 %v759_v4, %v758_v3 }
  0xc1   :  { %v644_v17 = vpop.f32.mrf.mxu0 }
  0xc2   :  { %911 = vperm.xlu0 %2344, %v880_v12   ;;  %v645_v20 = vadd.f32 %v644_v17, %v2640_v8  ;;  %v2836_v59 = vpop.permute.xlu2 %339 }
  0xc3   :  { %986 = vperm.xlu1 %2345, %v895_v16   ;;  %991 = vperm.xlu2 %2346, %v896_v28   ;;  %v2852_v16 = vpop.f32.mrf.mxu2 }
  0xc4   :  { %1998 = vmatmul.msk.bf16.gmra.mxu0 %vm540_vm1, %v2262_v15  ;;  %v760_v8 = vmax.f32 %v645_v20, 0.0  ;;  %v2822_v49 = vpop.permute.xlu0 %344 }
  0xc5   :  { %v2833_v57 = vpop.permute.xlu1 %349 }
  0xc9   :  { %v646_v25 = vpop.f32.mrf.mxu0 }
  0xca   :  { %v647_v27 = vadd.f32 %v646_v25, %v2655_v14  ;;  %1686 = vperm.xlu0 %2344, %v1653_v21   ;;  %v1650_v14 = vld [vmem:[%s3537_s6 + $0x18] sm:$0xff]  ;;  %v2845_v4 = vpop.permute.xlu2 %324 }
  0xcb   :  { %1676 = vperm.xlu1 %2345, %v1651_v23   ;;  %1681 = vperm.xlu2 %2346, %v1652_v35  }
  0xcc   :  { %v761_v29 = vmax.f32 %v647_v27, 0.0  ;;  %v2831_v55 = vpop.permute.xlu0 %259 }
  0xcd   :  { %v2840_v63 = vpop.permute.xlu1 %334 }
  0xce   :  { %v2778_v30 = vpack.c.bf16 %v761_v29, %v760_v8 }
  0xd1   :  { %v2791_v34 = vpop.f32.mrf.mxu0 }
  0xd2   :  { %1666 = vperm.xlu0 %2344, %v1649_v31   ;;  %v240_v28 = vpop.permute.xlu2 %239 }
  0xd3   :  { %1671 = vperm.xlu1 %2345, %v1650_v14   ;;  %1656 = vperm.xlu2 %2346, %v1647_v41   ;;  %v650_v41 = vadd.f32 %v2791_v34, %v2642_v9 }
  0xd4   :  { %1999 = vmatmul.msk.bf16.gmra.mxu0 %vm540_vm1, %v2263_v32  ;;  %v2838_v62 = vpop.permute.xlu0 %244  ;;  %v2859_v32 = vpop.f32.mrf.mxu2 }
  0xd5   :  { %v2850_v15 = vpop.permute.xlu1 %249 }
  0xd9   :  { %v651_v40 = vpop.f32.mrf.mxu0 }
  0xda   :  { %1661 = vperm.xlu0 %2344, %v1648_v38  }
  0xdb   :  { %1810 = vperm.xlu1 %2345, %v1807_v39  }
  0xdc   :  { %v2848_v12 = vpop.permute.xlu0 %329 }
  0xdd   :  { %v235_v35 = vpop.permute.xlu1 %234 }
  0xe1   :  { %v654_v47 = vpop.f32.mrf.mxu0 }
  0xe4   :  { %2000 = vmatmul.msk.bf16.gmra.mxu0 %vm540_vm1, %v2264_v46  ;;  %v2861_v14 = vpop.permute.xlu0 %314 }
  0xe9   :  { %v656_v52 = vpop.f32.mrf.mxu0 }
  0xea   :  { %v657_v8 = vadd.f32 %v656_v52, %v2617_v0  ;;  %v744_v52 = vpop.f32.mrf.mxu2 }
  0xec   :  { %v765_v0 = vmax.f32 %v657_v8, 0.0 }
  0xf1   :  { %v659_v56 = vpop.f32.mrf.mxu0 }
  0xf2   :  { %v660_v23 = vadd.f32 %v659_v56, %v2633_v6  ;;  %v762_v56 = vmax.f32 %v650_v41, 0.0 }
  0xf4   :  { %2001 = vmatmul.msk.bf16.gmra.mxu0 %vm540_vm1, %v2265_v54  ;;  %v766_v38 = vmax.f32 %v660_v23, 0.0  ;;  %v225_v54 = vpop.permute.xlu2 %224 }
  0xf9   :  { %v661_v61 = vpop.f32.mrf.mxu0 }
  0xfa   :  { %v662_v20 = vadd.f32 %v661_v61, %v2653_v13  ;;  %v652_v13 = vadd.f32 %v651_v40, %v2676_v22  ;;  %v2871_v40 = vpop.permute.xlu1 %319 }
  0xfc   :  { %v767_v29 = vmax.f32 %v662_v20, 0.0 }
  0xfe   :  { %v810_v39 = vpack.c.bf16 %v767_v29, %v766_v38  ;;  %v2014_v29 = vld [vmem:[%s3534_s3] sm:$0xf] }
 0x101   :  { %v664_v3 = vpop.f32.mrf.mxu0 }
 0x102   :  { %v665_v17 = vadd.f32 %v664_v3, %v2606_v60  ;;  %v655_v60 = vadd.f32 %v654_v47, %v2600_v58  ;;  %v763_v58 = vmax.f32 %v652_v13, 0.0 }
 0x104   :  { %2002 = vmatmul.msk.bf16.gmra.mxu0 %vm540_vm1, %v2266_v2  ;;  %v768_v25 = vmax.f32 %v665_v17, 0.0  ;;  %v764_v46 = vmax.f32 %v655_v60, 0.0  ;;  %v230_v2 = vpop.permute.xlu0 %229  ;;  %v808_v17 = vpack.c.bf16 %v763_v58, %v762_v56  ;;  %v742_v58 = vadd.f32 %v2859_v32, %v2789_v33 }
 0x106   :  { %v809_v47 = vpack.c.bf16 %v765_v0, %v764_v46  ;;  %v740_v46 = vadd.f32 %v2852_v16, %v2798_v37  ;;  %v799_v16 = vmax.f32 %v742_v58, 0.0 }
 0x108   :  { %v798_v37 = vmax.f32 %v740_v46, 0.0  ;;  %v2271_v46 = vld [vmem:[%s3532_s1 + $0xa0] sm:$0xff] }
 0x109   :  { %v666_v18 = vpop.f32.mrf.mxu0 }
 0x10a   :  { %v667_v21 = vadd.f32 %v666_v18, %v2619_v1  ;;  %v2267_v1 = vld [vmem:[%s3532_s1 + $0x80] sm:$0xff]  ;;  %v746_v18 = vpop.f32.mrf.mxu2  ;;  %v826_v32 = vpack.c.bf16 %v799_v16, %v798_v37 }
 0x10b   :  { %v747_v13 = vadd.f32 %v746_v18, %v2772_v26  ;;  %v2174_v18 = vld [vmem:[%s3534_s3 + $0x140] sm:$0xf] }
 0x10c   :  { %v769_v27 = vmax.f32 %v667_v21, 0.0  ;;  %v2268_v21 = vld [vmem:[%s3532_s1 + $0x88] sm:$0xff]  ;;  %v385_v60 = vpop.permute.xlu0 %384  ;;  %v2078_v16 = vld [vmem:[%s3534_s3 + $0x80] sm:$0xf] }
 0x10d   :  { %v801_v26 = vmax.f32 %v747_v13, 0.0 }
 0x10e   :  { %v811_v31 = vpack.c.bf16 %v769_v27, %v768_v25  ;;  %v2880_v27 = vpop.permute.xlu1 %304 }
 0x110   :  { %1310 = vmatpush.bf16.msra.mxu1 %v811_v31  ;;  %2334 = vmatpush.bf16.msra.mxu3 %v811_v31 }
 0x111   :  { %v669_v6 = vpop.f32.mrf.mxu0 }
 0x112   :  { %v670_v61 = vadd.f32 %v669_v6, %v225_v54  ;;  %v749_v8 = vpop.f32.mrf.mxu2  ;;  %v745_v6 = vadd.f32 %v744_v52, %v2744_v10 }
 0x113   :  { %v750_v0 = vadd.f32 %v749_v8, %v385_v60  ;;  %v2286_v60 = vld [vmem:[%s3534_s3 + $0x4c] sm:$0xf0] }
 0x114   :  { %2003 = vmatmul.msk.bf16.gmra.mxu0 %vm540_vm1, %v2267_v1  ;;  %1311 = vmatpush.bf16.msra.mxu1 %v810_v39  ;;  %v770_v9 = vmax.f32 %v670_v61, 0.0  ;;  %v800_v10 = vmax.f32 %v745_v6, 0.0  ;;  %v2269_v61 = vld [vmem:[%s3532_s1 + $0x90] sm:$0xff] }
 0x115   :  { %2335 = vmatpush.bf16.msra.mxu3 %v810_v39  ;;  %v802_v52 = vmax.f32 %v750_v0, 0.0  ;;  %v2322_v6 = vld [vmem:[%s3534_s3 + $0x16c] sm:$0xf0] }
 0x118   :  { %1312 = vmatpush.bf16.msra.mxu1 %v809_v47 }
 0x119   :  { %2336 = vmatpush.bf16.msra.mxu3 %v809_v47  ;;  %v671_v22 = vpop.f32.mrf.mxu0 }
 0x11a   :  { %v672_v3 = vadd.f32 %v671_v22, %v230_v2  ;;  %v751_v47 = vpop.f32.mrf.mxu2  ;;  %v827_v22 = vpack.c.bf16 %v801_v26, %v800_v10 }
 0x11c   :  { %v771_v34 = vmax.f32 %v672_v3, 0.0  ;;  %1313 = vmatpush.bf16.msra.mxu1 %v808_v17 }
 0x11d   :  { %2337 = vmatpush.bf16.msra.mxu3 %v808_v17  ;;  %v2030_v17 = vld [vmem:[%s3534_s3 + $0x20] sm:$0xf] }
 0x11e   :  { %v2873_v20 = vpack.c.bf16 %v771_v34, %v770_v9  ;;  %v2282_v9 = vld [vmem:[%s3534_s3 + $0x2c] sm:$0xf0] }
 0x120   :  { %1314 = vmatpush.bf16.msra.mxu1 %v2778_v30 }
 0x121   :  { %2338 = vmatpush.bf16.msra.mxu3 %v2778_v30  ;;  %v674_v23 = vpop.f32.mrf.mxu0  ;;  %v2278_v30 = vld [vmem:[%s3534_s3 + $0xc] sm:$0xf0] }
 0x122   :  { %v675_v25 = vadd.f32 %v674_v23, %v235_v35  ;;  %v2158_v35 = vld [vmem:[%s3534_s3 + $0x120] sm:$0xf]  ;;  %v2015_v1 = vor.u32 %v2278_v30, %v2014_v29  ;;  %v2031_v23 = vor.u32 %v2282_v9, %v2030_v17  ;;  %v2298_v17 = vld [vmem:[%s3534_s3 + $0xac] sm:$0xf0] }
 0x124   :  { %2004 = vmatmul.msk.bf16.gmra.mxu0 %vm540_vm1, %v2268_v21  ;;  %1315 = vmatpush.bf16.msra.mxu1 %v2742_v7  ;;  %v772_v39 = vmax.f32 %v675_v25, 0.0  ;;  %v2318_v21 = vld [vmem:[%s3534_s3 + $0x14c] sm:$0xf0] }
 0x125   :  { %2339 = vmatpush.bf16.msra.mxu3 %v2742_v7  ;;  %v2314_v7 = vld [vmem:[%s3534_s3 + $0x12c] sm:$0xf0]  ;;  %v2175_v29 = vor.u32 %v2318_v21, %v2174_v18 }
 0x128   :  { %1316 = vmatpush.bf16.msra.mxu1 %v2715_v51 }
 0x129   :  { %2340 = vmatpush.bf16.msra.mxu3 %v2715_v51  ;;  %v676_v31 = vpop.f32.mrf.mxu0  ;;  %v2159_v51 = vor.u32 %v2314_v7, %v2158_v35 }
 0x12a   :  { %v677_v38 = vadd.f32 %v676_v31, %v240_v28  ;;  %v390_v28 = vpop.permute.xlu1 %389  ;;  %v2270_v31 = vld [vmem:[%s3532_s1 + $0x98] sm:$0xff] }
 0x12b   :  { %v752_v56 = vadd.f32 %v751_v47, %v390_v28  ;;  %v2956_v28 = vld [vmem:[%s3534_s3 + $0x180] sm:$0xff]  ;;  %v2290_v47 = vld [vmem:[%s3534_s3 + $0x6c] sm:$0xf0] }
 0x12c   :  { %v773_v41 = vmax.f32 %v677_v38, 0.0  ;;  %1317 = vmatpush.bf16.msra.mxu1 %v2703_v42  ;;  %v1175_v10 = vunpack.c.l.b16 %v2956_v28 }
 0x12d   :  { %2341 = vmatpush.bf16.msra.mxu3 %v2703_v42  ;;  %v803_v2 = vmax.f32 %v752_v56, 0.0 }
 0x12e   :  { %v2907_v54 = vpack.c.bf16 %v773_v41, %v772_v39  ;;  %v1227_v56 = vpack.c.b16 %v1175_v10, %v1175_v10 }
 0x12f   :  { %1318 = vmatmul.bf16.vlgmr.msra.gmra.mxu1 %v2015_v1  ;;  %v828_v33 = vpack.c.bf16 %v803_v2, %v802_v52  ;;  %v2190_v1 = vld [vmem:[%s3534_s3 + $0x160] sm:$0xf] }
 0x130   :  { %1363 = vmatmul.bf16.vlgmr.msra.gmra.mxu3 %v2159_v51  ;;  %v2191_v41 = vor.u32 %v2322_v6, %v2190_v1 }
 0x131   :  { %v679_v42 = vpop.f32.mrf.mxu0  ;;  %1456 = vmatpush.bf16.msrb.mxu3 %v827_v22  ;;  %1536 = vmatpush.bf16.msrb.mxu1 %v828_v33 }
 0x132   :  { %v680_v3 = vadd.f32 %v679_v42, %v2838_v62  ;;  %v2294_v42 = vld [vmem:[%s3534_s3 + $0x8c] sm:$0xf0] }
 0x133   :  { %v2079_v22 = vor.u32 %v2294_v42, %v2078_v16 }
 0x134   :  { %2005 = vmatmul.msk.bf16.gmra.mxu0 %vm540_vm1, %v2269_v61  ;;  %v774_v25 = vmax.f32 %v680_v3, 0.0  ;;  %v2272_v61 = vld [vmem:[%s3532_s1 + $0xa8] sm:$0xff]  ;;  %v2094_v3 = vld [vmem:[%s3534_s3 + $0xa0] sm:$0xf] }
 0x135   :  { %1457 = vmatpush.bf16.msrb.mxu3 %v826_v32  ;;  %v2975_v32 = vpop.permute.xlu0 %981 }
 0x139   :  { %v681_v34 = vpop.f32.mrf.mxu0 }
 0x13a   :  { %v682_v62 = vadd.f32 %v681_v34, %v2850_v15  ;;  %v2046_v15 = vld [vmem:[%s3534_s3 + $0x40] sm:$0xf]  ;;  %v2095_v34 = vor.u32 %v2298_v17, %v2094_v3 }
 0x13b   :  { %v2142_v3 = vld [vmem:[%s3534_s3 + $0x100] sm:$0xf] }
 0x13c   :  { %v775_v8 = vmax.f32 %v682_v62, 0.0  ;;  %v310_v62 = vpop.permute.xlu2 %309 }
 0x13d   :  { %v2983_v18 = vpop.permute.xlu0 %956 }
 0x13e   :  { %v2927_v30 = vpack.c.bf16 %v775_v8, %v774_v25  ;;  %v2110_v25 = vld [vmem:[%s3534_s3 + $0xc0] sm:$0xf]  ;;  %v2302_v8 = vld [vmem:[%s3534_s3 + $0xcc] sm:$0xf0] }
 0x13f   :  { %1323 = vmatmul.bf16.gmra.mxu1 %v2031_v23 }
 0x140   :  { %1368 = vmatmul.bf16.gmra.mxu3 %v2175_v29 }
 0x141   :  { %v684_v35 = vpop.f32.mrf.mxu0 }
 0x142   :  { %v685_v7 = vadd.f32 %v684_v35, %v2826_v53  ;;  %v2047_v53 = vor.u32 %v2286_v60, %v2046_v15  ;;  %v2111_v15 = vor.u32 %v2302_v8, %v2110_v25 }
 0x144   :  { %2006 = vmatmul.msk.bf16.gmra.mxu0 %vm540_vm1, %v2270_v31  ;;  %v776_v0 = vmax.f32 %v685_v7, 0.0 }
 0x145   :  { %v2994_v7 = vpop.permute.xlu0 %951 }
 0x149   :  { %v686_v38 = vpop.f32.mrf.mxu0 }
 0x14a   :  { %v687_v13 = vadd.f32 %v686_v38, %v2831_v55  ;;  %v2062_v55 = vld [vmem:[%s3534_s3 + $0x60] sm:$0xf] }
 0x14b   :  { %v2063_v52 = vor.u32 %v2290_v47, %v2062_v55 }
 0x14c   :  { %v777_v39 = vmax.f32 %v687_v13, 0.0 }
 0x14d   :  { %v3003_v47 = vpop.permute.xlu0 %941 }
 0x14e   :  { %v2947_v51 = vpack.c.bf16 %v777_v39, %v776_v0  ;;  %v2999_v39 = vpop.permute.xlu2 %976 }
 0x14f   :  { %1328 = vmatmul.bf16.gmra.mxu1 %v2047_v53 }
 0x150   :  { %1373 = vmatmul.bf16.gmra.mxu3 %v2191_v41 }
 0x151   :  { %v689_v58 = vpop.f32.mrf.mxu0 }
 0x154   :  { %2007 = vmatmul.msk.bf16.gmra.mxu0 %vm540_vm1, %v2271_v46 }
 0x159   :  { %v691_v26 = vpop.f32.mrf.mxu0 }
 0x15f   :  { %1333 = vmatmul.bf16.gmra.mxu1 %v2063_v52 }
 0x160   :  { %1378 = vmatmul.bf16.gmra.mxu3 %v1227_v56  ;;  %v2126_v56 = vld [vmem:[%s3534_s3 + $0xe0] sm:$0xf] }
 0x161   :  { %v694_v37 = vpop.f32.mrf.mxu0 }
 0x162   :  { %v695_v53 = vadd.f32 %v694_v37, %v2796_v36 }
 0x164   :  { %2008 = vmatmul.msk.bf16.gmra.mxu0 %vm540_vm1, %v2272_v61  ;;  %v780_v55 = vmax.f32 %v695_v53, 0.0  ;;  %v3012_v61 = vpop.permute.xlu2 %971 }
 0x169   :  { %v696_v2 = vpop.f32.mrf.mxu0 }
 0x16a   :  { %v697_v1 = vadd.f32 %v696_v2, %v2814_v45 }
 0x16c   :  { %v781_v41 = vmax.f32 %v697_v1, 0.0 }
 0x16e   :  { %v817_v10 = vpack.c.bf16 %v781_v41, %v780_v55 }
 0x16f   :  { %1338 = vmatmul.bf16.gmra.mxu1 %v2079_v22 }
 0x171   :  { %v699_v33 = vpop.f32.mrf.mxu0 }
 0x172   :  { %v700_v60 = vadd.f32 %v699_v33, %v2761_v19  ;;  %v690_v19 = vadd.f32 %v689_v58, %v2824_v50  ;;  %v3020_v33 = vpop.permute.xlu2 %946 }
 0x174   :  { %v782_v0 = vmax.f32 %v700_v60, 0.0  ;;  %v778_v52 = vmax.f32 %v690_v19, 0.0 }
 0x179   :  { %v701_v9 = vpop.f32.mrf.mxu0 }
 0x17a   :  { %v702_v31 = vadd.f32 %v701_v9, %v2770_v24  ;;  %v2310_v9 = vld [vmem:[%s3534_s3 + $0x10c] sm:$0xf0] }
 0x17c   :  { %v783_v6 = vmax.f32 %v702_v31, 0.0 }
 0x17e   :  { %v818_v46 = vpack.c.bf16 %v783_v6, %v782_v0 }
 0x17f   :  { %1343 = vmatmul.bf16.gmra.mxu1 %v2095_v34 }
 0x181   :  { %v704_v21 = vpop.f32.mrf.mxu0 }
 0x182   :  { %v705_v23 = vadd.f32 %v704_v21, %v2746_v11 }
 0x184   :  { %v784_v38 = vmax.f32 %v705_v23, 0.0 }
 0x189   :  { %v706_v29 = vpop.f32.mrf.mxu0 }
 0x18a   :  { %v707_v35 = vadd.f32 %v706_v29, %v2740_v5  ;;  %v692_v5 = vadd.f32 %v691_v26, %v2820_v48  ;;  %v2306_v48 = vld [vmem:[%s3534_s3 + $0xec] sm:$0xf0]  ;;  %v3042_v29 = vpop.permute.xlu2 %936 }
 0x18b   :  { %v2127_v37 = vor.u32 %v2306_v48, %v2126_v56 }
 0x18c   :  { %v785_v11 = vmax.f32 %v707_v35, 0.0  ;;  %v779_v45 = vmax.f32 %v692_v5, 0.0 }
 0x18e   :  { %v819_v13 = vpack.c.bf16 %v785_v11, %v784_v38  ;;  %v816_v58 = vpack.c.bf16 %v779_v45, %v778_v52  ;;  %v2032_v11 = vld [vmem:[%s3534_s3 + $0x30] sm:$0xf0]  ;;  %v2284_v45 = vld [vmem:[%s3534_s3 + $0x44] sm:$0xf] }
 0x18f   :  { %1348 = vmatmul.bf16.gmra.mxu1 %v2111_v15 }
 0x190   :  { %1383 = vmatpush.bf16.msrb.mxu2 %v819_v13 }
 0x191   :  { %v709_v24 = vpop.f32.mrf.mxu0 }
 0x192   :  { %v710_v36 = vadd.f32 %v709_v24, %v2880_v27  ;;  %v3016_v27 = vpop.permute.xlu0 %926  ;;  %v3058_v1 = vpop.permute.xlu2 %1021 }
 0x194   :  { %1384 = vmatpush.bf16.msrb.mxu2 %v818_v46  ;;  %v786_v16 = vmax.f32 %v710_v36, 0.0 }
 0x198   :  { %1385 = vmatpush.bf16.msrb.mxu2 %v817_v10  ;;  %v2048_v10 = vld [vmem:[%s3534_s3 + $0x50] sm:$0xf0] }
 0x199   :  { %v711_v26 = vpop.f32.mrf.mxu0  ;;  %v2051_v48 = vor.u32 %v2284_v45, %v2048_v10 }
 0x19a   :  { %v712_v50 = vadd.f32 %v711_v26, %v310_v62  ;;  %v3036_v34 = vpop.permute.xlu0 %1011  ;;  %v1007_v41 = vpop.permute.xlu2 %1006 }
 0x19c   :  { %v787_v42 = vmax.f32 %v712_v50, 0.0  ;;  %1386 = vmatpush.bf16.msrb.mxu2 %v816_v58 }
 0x19e   :  { %v3014_v2 = vpack.c.bf16 %v787_v42, %v786_v16  ;;  %v2288_v42 = vld [vmem:[%s3534_s3 + $0x64] sm:$0xf] }
 0x19f   :  { %1353 = vmatmul.bf16.gmra.mxu1 %v2127_v37 }
 0x1a0   :  { %1387 = vmatpush.bf16.msrb.mxu2 %v2947_v51  ;;  %v2276_v51 = vld [vmem:[%s3534_s3 + $0x4] sm:$0xf] }
 0x1a1   :  { %v714_v22 = vpop.f32.mrf.mxu0 }
 0x1a2   :  { %v715_v17 = vadd.f32 %v714_v22, %v2861_v14  ;;  %v2143_v14 = vor.u32 %v2310_v9, %v2142_v3  ;;  %v997_v35 = vpop.permute.xlu0 %996  ;;  %v2064_v22 = vld [vmem:[%s3534_s3 + $0x70] sm:$0xf0] }
 0x1a3   :  { %v2067_v9 = vor.u32 %v2288_v42, %v2064_v22 }
 0x1a4   :  { %1388 = vmatpush.bf16.msrb.mxu2 %v2927_v30  ;;  %v2016_v30 = vld [vmem:[%s3534_s3 + $0x10] sm:$0xf0] }
 0x1a5   :  { %v2019_v23 = vor.u32 %v2276_v51, %v2016_v30 }
 0x1a8   :  { %1389 = vmatpush.bf16.msrb.mxu2 %v2907_v54  ;;  %v788_v54 = vmax.f32 %v715_v17, 0.0 }
 0x1a9   :  { %v716_v21 = vpop.f32.mrf.mxu0 }
 0x1aa   :  { %v717_v62 = vadd.f32 %v716_v21, %v2871_v40  ;;  %v3050_v40 = vpop.permute.xlu1 %966 }
 0x1ac   :  { %v789_v25 = vmax.f32 %v717_v62, 0.0  ;;  %1390 = vmatpush.bf16.msrb.mxu2 %v2873_v20  ;;  %v3046_v60 = vpop.f32.mrf.mxu1  ;;  %v2280_v20 = vld [vmem:[%s3534_s3 + $0x24] sm:$0xf]  ;;  %v2277_v62 = vld [vmem:[%s3534_s3 + $0xc] sm:$0xf] }
 0x1ad   :  { %v2035_v53 = vor.u32 %v2280_v20, %v2032_v11 }
 0x1ae   :  { %v3040_v8 = vpack.c.bf16 %v789_v25, %v788_v54 }
 0x1af   :  { %1358 = vmatmul.bf16.gmra.mxu1 %v2143_v14  ;;  %1391 = vmatmul.bf16.vlgmr.msrb.gmra.mxu2 %v2019_v23  ;;  %v2024_v23 = vld [vmem:[%s3534_s3 + $0x18] sm:$0xf0] }
 0x1b0   :  { %v2027_v54 = vor.u32 %v2277_v62, %v2024_v23 }
 0x1b1   :  { %v3044_v31 = vpop.f32.mrf.mxu0 }
 0x1b2   :  { %v3064_v24 = vpop.permute.xlu1 %961 }
 0x1b3   :  { %v1364_v15 = vpop.f32.mrf.mxu3 }
 0x1b4   :  { %v3048_v38 = vadd.f32 %v1364_v15, %v997_v35  ;;  %v3062_v0 = vpop.f32.mrf.mxu1  ;;  %v2292_v35 = vld [vmem:[%s3534_s3 + $0x84] sm:$0xf]  ;;  %v2080_v15 = vld [vmem:[%s3534_s3 + $0x90] sm:$0xf0] }
 0x1b9   :  { %v721_v6 = vpop.f32.mrf.mxu0 }
 0x1ba   :  { %v3076_v52 = vpop.permute.xlu1 %1026 }
 0x1bb   :  { %v3060_v13 = vpop.f32.mrf.mxu3 }
 0x1bc   :  { %v3068_v55 = vpop.f32.mrf.mxu1 }
 0x1bf   :  { %1396 = vmatmul.bf16.gmra.mxu2 %v2035_v53  ;;  %2204 = vmatmul.msk.bf16.vlgmr.msrb.gmra.mxu1 %vm1270_vm2, %v2027_v54  ;;  %v2022_v54 = vld [vmem:[%s3534_s3 + $0x8] sm:$0xf] }
 0x1c1   :  { %v724_v5 = vpop.f32.mrf.mxu0 }
 0x1c2   :  { %v1017_v58 = vpop.permute.xlu1 %1016  ;;  %v725_v42 = vadd.f32 %v724_v5, %v2840_v63  ;;  %v2040_v63 = vld [vmem:[%s3534_s3 + $0x38] sm:$0xf0] }
 0x1c3   :  { %v1369_v46 = vpop.f32.mrf.mxu3 }
 0x1c4   :  { %v3066_v19 = vadd.f32 %v1369_v46, %v1007_v41  ;;  %v3080_v50 = vpop.f32.mrf.mxu1  ;;  %v2083_v41 = vor.u32 %v2292_v35, %v2080_v15 }
 0x1c9   :  { %v726_v36 = vpop.f32.mrf.mxu0 }
 0x1cb   :  { %v3078_v56 = vpop.f32.mrf.mxu3 }
 0x1cc   :  { %v3092_v51 = vpop.f32.mrf.mxu1 }
 0x1cf   :  { %1401 = vmatmul.bf16.gmra.mxu2 %v2051_v48  ;;  %v727_v48 = vadd.f32 %v726_v36, %v2836_v59  ;;  %v2281_v59 = vld [vmem:[%s3534_s3 + $0x2c] sm:$0xf] }
 0x1d0   :  { %v2043_v5 = vor.u32 %v2281_v59, %v2040_v63  ;;  %v3197_v63 = vpop.permute.xlu2 %921 }
 0x1d1   :  { %v729_v26 = vpop.f32.mrf.mxu0 }
 0x1d2   :  { %v730_v45 = vadd.f32 %v729_v26, %v2822_v49  ;;  %v720_v49 = vadd.f32 %v3044_v31, %v2845_v4  ;;  %v792_v26 = vmax.f32 %v725_v42, 0.0  ;;  %v2096_v4 = vld [vmem:[%s3534_s3 + $0xb0] sm:$0xf0]  ;;  %2205 = vmatmul.msk.bf16.gmra.mxu1 %vm1270_vm2, %v2043_v5 }
 0x1d3   :  { %v1374_v37 = vpop.f32.mrf.mxu3 }
 0x1d4   :  { %v3082_v16 = vadd.f32 %v1374_v37, %v1017_v58  ;;  %v3099_v14 = vpop.f32.mrf.mxu1  ;;  %v794_v22 = vmax.f32 %v730_v45, 0.0  ;;  %v790_v62 = vmax.f32 %v720_v49, 0.0  ;;  %v2038_v45 = vld [vmem:[%s3534_s3 + $0x28] sm:$0xf]  ;;  %v2287_v49 = vld [vmem:[%s3534_s3 + $0x54] sm:$0xf0] }
 0x1d9   :  { %v731_v3 = vpop.f32.mrf.mxu0 }
 0x1da   :  { %v732_v11 = vadd.f32 %v731_v3, %v2833_v57  ;;  %v722_v57 = vadd.f32 %v721_v6, %v2848_v12  ;;  %v2296_v12 = vld [vmem:[%s3534_s3 + $0xa4] sm:$0xf] }
 0x1db   :  { %v3090_v17 = vpop.f32.mrf.mxu3  ;;  %v2099_v23 = vor.u32 %v2296_v12, %v2096_v4  ;;  %v2144_v12 = vld [vmem:[%s3534_s3 + $0x110] sm:$0xf0] }
 0x1dc   :  { %v795_v58 = vmax.f32 %v732_v11, 0.0  ;;  %v791_v36 = vmax.f32 %v722_v57, 0.0  ;;  %v2128_v57 = vld [vmem:[%s3534_s3 + $0xf0] sm:$0xf0] }
 0x1de   :  { %v824_v3 = vpack.c.bf16 %v795_v58, %v794_v22  ;;  %v822_v6 = vpack.c.bf16 %v791_v36, %v790_v62  ;;  %v2072_v58 = vld [vmem:[%s3534_s3 + $0x78] sm:$0xf0]  ;;  %v2304_v22 = vld [vmem:[%s3534_s3 + $0xe4] sm:$0xf]  ;;  %v2293_v36 = vld [vmem:[%s3534_s3 + $0x8c] sm:$0xf] }
 0x1df   :  { %1406 = vmatmul.bf16.gmra.mxu2 %v2067_v9  ;;  %v3117_v9 = vpop.f32.mrf.mxu1  ;;  %v2308_v62 = vld [vmem:[%s3534_s3 + $0x104] sm:$0xf] }
 0x1e0   :  { %v2147_v4 = vor.u32 %v2308_v62, %v2144_v12  ;;  %v2316_v12 = vld [vmem:[%s3534_s3 + $0x144] sm:$0xf] }
 0x1e1   :  { %v734_v30 = vpop.f32.mrf.mxu0 }
 0x1e2   :  { %v735_v25 = vadd.f32 %v734_v30, %v2810_v43 }
 0x1e3   :  { %v3094_v21 = vpop.f32.mrf.mxu3 }
 0x1e4   :  { %v796_v43 = vmax.f32 %v735_v25, 0.0  ;;  %v2279_v25 = vld [vmem:[%s3534_s3 + $0x14] sm:$0xf0] }
 0x1e5   :  { %v2023_v35 = vor.u32 %v2279_v25, %v2022_v54  ;;  %v2070_v54 = vld [vmem:[%s3534_s3 + $0x68] sm:$0xf]  ;;  %v2291_v25 = vld [vmem:[%s3534_s3 + $0x74] sm:$0xf0] }
 0x1e7   :  { %v3135_v31 = vpop.f32.mrf.mxu1 }
 0x1e9   :  { %v736_v20 = vpop.f32.mrf.mxu0 }
 0x1ea   :  { %v737_v53 = vadd.f32 %v736_v20, %v2812_v44  ;;  %v793_v44 = vmax.f32 %v727_v48, 0.0  ;;  %v2285_v20 = vld [vmem:[%s3534_s3 + $0x4c] sm:$0xf] }
 0x1eb   :  { %v1381_v46 = vpop.f32.mrf.mxu3  ;;  %v2289_v48 = vld [vmem:[%s3534_s3 + $0x6c] sm:$0xf] }
 0x1ec   :  { %v797_v10 = vmax.f32 %v737_v53, 0.0  ;;  %v823_v30 = vpack.c.bf16 %v793_v44, %v792_v26  ;;  %v2300_v53 = vld [vmem:[%s3534_s3 + $0xc4] sm:$0xf]  ;;  %v2131_v44 = vor.u32 %v2304_v22, %v2128_v57  ;;  %v2086_v57 = vld [vmem:[%s3534_s3 + $0x88] sm:$0xf] }
 0x1ee   :  { %v825_v37 = vpack.c.bf16 %v797_v10, %v796_v43  ;;  %v2283_v43 = vld [vmem:[%s3534_s3 + $0x34] sm:$0xf0] }
 0x1ef   :  { %1411 = vmatmul.bf16.gmra.mxu2 %v2083_v41  ;;  %v3144_v15 = vpop.f32.mrf.mxu1  ;;  %v2112_v41 = vld [vmem:[%s3534_s3 + $0xd0] sm:$0xf0]  ;;  %v2039_v10 = vor.u32 %v2283_v43, %v2038_v45 }
 0x1f0   :  { %1458 = vmatpush.bf16.msrb.mxu3 %v825_v37  ;;  %v2075_v37 = vor.u32 %v2289_v48, %v2072_v58 }
 0x1f4   :  { %1459 = vmatpush.bf16.msrb.mxu3 %v824_v3  ;;  %v2054_v3 = vld [vmem:[%s3534_s3 + $0x48] sm:$0xf] }
 0x1f5   :  { %v2055_v59 = vor.u32 %v2287_v49, %v2054_v3 }
 0x1f7   :  { %v3160_v46 = vpop.f32.mrf.mxu1 }
 0x1f8   :  { %1460 = vmatpush.bf16.msrb.mxu3 %v823_v30  ;;  %v2088_v30 = vld [vmem:[%s3534_s3 + $0x98] sm:$0xf0] }
 0x1f9   :  { %v2091_v5 = vor.u32 %v2293_v36, %v2088_v30  ;;  %v2301_v30 = vld [vmem:[%s3534_s3 + $0xcc] sm:$0xf] }
 0x1fc   :  { %1461 = vmatpush.bf16.msrb.mxu3 %v822_v6 }
 0x1ff   :  { %1416 = vmatmul.bf16.gmra.mxu2 %v2099_v23  ;;  %v3174_v42 = vpop.f32.mrf.mxu1  ;;  %v907_v23 = vpop.permute.xlu2 %906 }
 0x200   :  { %1462 = vmatpush.bf16.msrb.mxu3 %v3040_v8  ;;  %v2056_v8 = vld [vmem:[%s3534_s3 + $0x58] sm:$0xf0] }
 0x201   :  { %v2059_v11 = vor.u32 %v2285_v20, %v2056_v8 }
 0x203   :  { %2206 = vmatmul.msk.bf16.gmra.mxu1 %vm1270_vm2, %v2059_v11  ;;  %v2071_v11 = vor.u32 %v2291_v25, %v2070_v54  ;;  %v2102_v25 = vld [vmem:[%s3534_s3 + $0xa8] sm:$0xf] }
 0x204   :  { %1463 = vmatpush.bf16.msrb.mxu3 %v3014_v2  ;;  %v2115_v2 = vor.u32 %v2300_v53, %v2112_v41  ;;  %v2297_v53 = vld [vmem:[%s3534_s3 + $0xac] sm:$0xf]  ;;  %v2104_v41 = vld [vmem:[%s3534_s3 + $0xb8] sm:$0xf0] }
 0x205   :  { %v2107_v43 = vor.u32 %v2297_v53, %v2104_v41 }
 0x207   :  { %1464 = vmatmul.bf16.vlgmr.msrb.gmra.mxu3 %v2023_v35  ;;  %v3189_v26 = vpop.f32.mrf.mxu1  ;;  %v1320_v35 = vadd.f32 %v3046_v60, %v907_v23  ;;  %v2312_v60 = vld [vmem:[%s3534_s3 + $0x124] sm:$0xf] }
 0x20f   :  { %1421 = vmatmul.bf16.gmra.mxu2 %v2115_v2  ;;  %v3206_v6 = vpop.f32.mrf.mxu1  ;;  %v3223_v2 = vpop.permute.xlu1 %931 }
 0x213   :  { %2207 = vmatmul.msk.bf16.gmra.mxu1 %vm1270_vm2, %v2075_v37 }
 0x217   :  { %1469 = vmatmul.bf16.gmra.mxu3 %v2039_v10  ;;  %v3225_v45 = vpop.f32.mrf.mxu1  ;;  %v2160_v10 = vld [vmem:[%s3534_s3 + $0x130] sm:$0xf0]  ;;  %v917_v37 = vpop.permute.xlu1 %916 }
 0x218   :  { %v2163_v58 = vor.u32 %v2312_v60, %v2160_v10  ;;  %v1325_v3 = vadd.f32 %v3068_v55, %v917_v37  ;;  %v2176_v55 = vld [vmem:[%s3534_s3 + $0x150] sm:$0xf0]  ;;  %v2305_v60 = vld [vmem:[%s3534_s3 + $0xec] sm:$0xf]  ;;  %v2136_v10 = vld [vmem:[%s3534_s3 + $0xf8] sm:$0xf0] }
 0x219   :  { %v2179_v54 = vor.u32 %v2316_v12, %v2176_v55  ;;  %v2309_v12 = vld [vmem:[%s3534_s3 + $0x10c] sm:$0xf]  ;;  %v2152_v55 = vld [vmem:[%s3534_s3 + $0x118] sm:$0xf0] }
 0x21f   :  { %1426 = vmatmul.bf16.gmra.mxu2 %v2131_v44  ;;  %v3236_v22 = vpop.f32.mrf.mxu1  ;;  %v2295_v44 = vld [vmem:[%s3534_s3 + $0x94] sm:$0xf0] }
 0x220   :  { %v2087_v36 = vor.u32 %v2295_v44, %v2086_v57 }
 0x223   :  { %2208 = vmatmul.msk.bf16.gmra.mxu1 %vm1270_vm2, %v2091_v5  ;;  %v2120_v5 = vld [vmem:[%s3534_s3 + $0xd8] sm:$0xf0] }
 0x224   :  { %v2123_v62 = vor.u32 %v2301_v30, %v2120_v5 }
 0x227   :  { %1474 = vmatmul.bf16.gmra.mxu3 %v2055_v59 }
 0x22f   :  { %1431 = vmatmul.bf16.gmra.mxu2 %v2147_v4  ;;  %v3260_v4 = vpop.f32.mrf.mxu1 }
 0x232   :  { %v1392_v20 = vpop.f32.mrf.mxu2 }
 0x233   :  { %v3215_v8 = vadd.f32 %v1392_v20, %v1320_v35  ;;  %2209 = vmatmul.msk.bf16.gmra.mxu1 %vm1270_vm2, %v2107_v43  ;;  %v2299_v35 = vld [vmem:[%s3534_s3 + $0xb4] sm:$0xf0]  ;;  %v1330_v20 = vadd.f32 %v3092_v51, %v3016_v27  ;;  %v2320_v27 = vld [vmem:[%s3534_s3 + $0x164] sm:$0xf]  ;;  %v2192_v51 = vld [vmem:[%s3534_s3 + $0x170] sm:$0xf0] }
 0x234   :  { %v2103_v41 = vor.u32 %v2299_v35, %v2102_v25  ;;  %v2195_v57 = vor.u32 %v2320_v27, %v2192_v51  ;;  %v2155_v25 = vor.u32 %v2309_v12, %v2152_v55  ;;  %v1176_v35 = vunpack.c.h.b16 %v2956_v28  ;;  %v2313_v27 = vld [vmem:[%s3534_s3 + $0x12c] sm:$0xf] }
 0x237   :  { %1479 = vmatmul.bf16.gmra.mxu3 %v2071_v11  ;;  %v3274_v43 = vpop.f32.mrf.mxu1 }
 0x23a   :  { %v3234_v48 = vpop.f32.mrf.mxu2 }
 0x23f   :  { %1436 = vmatmul.bf16.gmra.mxu2 %v2163_v58  ;;  %v2139_v58 = vor.u32 %v2305_v60, %v2136_v10  ;;  %v3291_v44 = vpop.f32.mrf.mxu1  ;;  %v1340_v60 = vadd.f32 %v3144_v15, %v3020_v33  ;;  %v2150_v15 = vld [vmem:[%s3534_s3 + $0x108] sm:$0xf] }
 0x242   :  { %v1397_v49 = vpop.f32.mrf.mxu2 }
 0x243   :  { %v3245_v59 = vadd.f32 %v1397_v49, %v1325_v3  ;;  %2210 = vmatmul.msk.bf16.gmra.mxu1 %vm1270_vm2, %v2123_v62  ;;  %v2118_v3 = vld [vmem:[%s3534_s3 + $0xc8] sm:$0xf]  ;;  %v2303_v49 = vld [vmem:[%s3534_s3 + $0xd4] sm:$0xf0] }
 0x244   :  { %v2119_v62 = vor.u32 %v2303_v49, %v2118_v3 }
 0x247   :  { %1484 = vmatmul.bf16.gmra.mxu3 %v2087_v36  ;;  %v1335_v36 = vadd.f32 %v3117_v9, %v3042_v29  ;;  %v1228_v9 = vpack.c.b16 %v1176_v35, %v1176_v35 }
 0x24a   :  { %v3262_v23 = vpop.f32.mrf.mxu2 }
 0x24f   :  { %1441 = vmatmul.bf16.gmra.mxu2 %v2179_v54  ;;  %v1538_v54 = vpop.f32.mrf.mxu1 }
 0x252   :  { %v1402_v11 = vpop.f32.mrf.mxu2 }
 0x253   :  { %v3272_v53 = vadd.f32 %v1402_v11, %v1330_v20  ;;  %2211 = vmatmul.msk.bf16.gmra.mxu1 %vm1270_vm2, %v2139_v58  ;;  %v2134_v11 = vld [vmem:[%s3534_s3 + $0xe8] sm:$0xf] }
 0x257   :  { %1489 = vmatmul.bf16.gmra.mxu3 %v2103_v41  ;;  %v1540_v20 = vpop.f32.mrf.mxu1  ;;  %v2307_v41 = vld [vmem:[%s3534_s3 + $0xf4] sm:$0xf0] }
 0x258   :  { %v2135_v58 = vor.u32 %v2307_v41, %v2134_v11 }
 0x25a   :  { %v3289_v37 = vpop.f32.mrf.mxu2 }
 0x25f   :  { %1446 = vmatmul.bf16.gmra.mxu2 %v2195_v57  ;;  %v1543_v51 = vpop.f32.mrf.mxu1  ;;  %v2168_v57 = vld [vmem:[%s3534_s3 + $0x138] sm:$0xf0] }
 0x260   :  { %v2171_v3 = vor.u32 %v2313_v27, %v2168_v57  ;;  %v2166_v57 = vld [vmem:[%s3534_s3 + $0x128] sm:$0xf] }
 0x262   :  { %v1407_v30 = vpop.f32.mrf.mxu2 }
 0x263   :  { %v3301_v5 = vadd.f32 %v1407_v30, %v1335_v36  ;;  %2212 = vmatmul.msk.bf16.gmra.mxu1 %vm1270_vm2, %v2155_v25  ;;  %v2311_v36 = vld [vmem:[%s3534_s3 + $0x114] sm:$0xf0]  ;;  %v1345_v30 = vadd.f32 %v3174_v42, %v2983_v18  ;;  %v2317_v25 = vld [vmem:[%s3534_s3 + $0x14c] sm:$0xf] }
 0x264   :  { %v2151_v55 = vor.u32 %v2311_v36, %v2150_v15  ;;  %v1350_v15 = vadd.f32 %v3206_v6, %v3050_v40 }
 0x267   :  { %1494 = vmatmul.bf16.gmra.mxu3 %v2119_v62  ;;  %v1545_v33 = vpop.f32.mrf.mxu1 }
 0x26a   :  { %v3311_v29 = vpop.f32.mrf.mxu2 }
 0x26f   :  { %1451 = vmatmul.bf16.gmra.mxu2 %v1228_v9  ;;  %v2184_v9 = vld [vmem:[%s3534_s3 + $0x158] sm:$0xf0] }
 0x270   :  { %v2187_v11 = vor.u32 %v2317_v25, %v2184_v9  ;;  %v2321_v25 = vld [vmem:[%s3534_s3 + $0x16c] sm:$0xf] }
 0x272   :  { %v1412_v28 = vpop.f32.mrf.mxu2 }
 0x273   :  { %v3321_v10 = vadd.f32 %v1412_v28, %v1340_v60  ;;  %2213 = vmatmul.msk.bf16.gmra.mxu1 %vm1270_vm2, %v2171_v3  ;;  %v912_v28 = vpop.permute.xlu0 %911  ;;  %v2315_v3 = vld [vmem:[%s3534_s3 + $0x134] sm:$0xf0] }
 0x274   :  { %v1322_v27 = vadd.f32 %v3062_v0, %v912_v28 }
 0x276   :  { %v1395_v36 = vadd.f32 %v3234_v48, %v1322_v27 }
 0x277   :  { %1499 = vmatmul.bf16.gmra.mxu3 %v2135_v58 }
 0x27a   :  { %v3330_v49 = vpop.f32.mrf.mxu2 }
 0x280   :  { %v1548_v35 = vpop.f32.mrf.mxu1 }
 0x282   :  { %v1417_v62 = vpop.f32.mrf.mxu2 }
 0x283   :  { %v3340_v12 = vadd.f32 %v1417_v62, %v1345_v30  ;;  %2214 = vmatmul.msk.bf16.gmra.mxu1 %vm1270_vm2, %v2187_v11  ;;  %v2200_v11 = vld [vmem:[%s3534_s3 + $0x178] sm:$0xf0] }
 0x284   :  { %v2203_v6 = vor.u32 %v2321_v25, %v2200_v11  ;;  %v3394_v25 = vpop.permute.xlu1 %1001 }
 0x287   :  { %1504 = vmatmul.bf16.gmra.mxu3 %v2151_v55  ;;  %v2167_v55 = vor.u32 %v2315_v3, %v2166_v57  ;;  %v1327_v3 = vadd.f32 %v3080_v50, %v3197_v63  ;;  %v878_v50 = vld [vmem:[%s3534_s3 + $0x188] sm:$0xff] }
 0x288   :  { %v3352_v58 = vpop.f32.mrf.mxu1  ;;  %v1178_v63 = vunpack.c.h.b16 %v878_v50 }
 0x28a   :  { %v3349_v41 = vpop.f32.mrf.mxu2  ;;  %v1465_v18 = vpop.f32.mrf.mxu3 }
 0x28b   :  { %v1466_v42 = vadd.f32 %v1465_v18, %v3215_v8 }
 0x28d   :  { %v1539_v60 = vadd.f32 %v1538_v54, %v1466_v42 }
 0x28f   :  { %v1602_v18 = vmax.f32 %v1539_v60, 0.0  ;;  %v2182_v60 = vld [vmem:[%s3534_s3 + $0x148] sm:$0xf] }
 0x290   :  { %v1553_v9 = vpop.f32.mrf.mxu1 }
 0x292   :  { %v1422_v8 = vpop.f32.mrf.mxu2  ;;  %v1467_v54 = vpop.f32.mrf.mxu3 }
 0x293   :  { %v3364_v30 = vadd.f32 %v1422_v8, %v1350_v15  ;;  %v1468_v62 = vadd.f32 %v1467_v54, %v1395_v36  ;;  %2215 = vmatmul.msk.bf16.gmra.mxu1 %vm1270_vm2, %v2203_v6  ;;  %v2319_v15 = vld [vmem:[%s3534_s3 + $0x154] sm:$0xf0]  ;;  %v1355_v36 = vadd.f32 %v3236_v22, %v2999_v39  ;;  %v1400_v8 = vadd.f32 %v3262_v23, %v1327_v3 }
 0x295   :  { %v1541_v0 = vadd.f32 %v1540_v20, %v1468_v62 }
 0x297   :  { %v1603_v40 = vmax.f32 %v1541_v0, 0.0  ;;  %1509 = vmatmul.bf16.gmra.mxu3 %v2167_v55  ;;  %v2183_v55 = vor.u32 %v2319_v15, %v2182_v60  ;;  %v987_v60 = vpop.permute.xlu1 %986  ;;  %v2323_v15 = vld [vmem:[%s3534_s3 + $0x174] sm:$0xf0] }
 0x298   :  { %v1555_v57 = vpop.f32.mrf.mxu1 }
 0x299   :  { %v3373_v48 = vpack.c.bf16 %v1603_v40, %v1602_v18  ;;  %v1230_v18 = vpack.c.b16 %v1178_v63, %v1178_v63 }
 0x29a   :  { %v3375_v42 = vpop.f32.mrf.mxu2  ;;  %v1470_v20 = vpop.f32.mrf.mxu3 }
 0x29b   :  { %v1471_v28 = vadd.f32 %v1470_v20, %v3245_v59 }
 0x29d   :  { %v1544_v27 = vadd.f32 %v1543_v51, %v1471_v28 }
 0x29f   :  { %v1604_v40 = vmax.f32 %v1544_v27, 0.0  ;;  %v2198_v27 = vld [vmem:[%s3534_s3 + $0x168] sm:$0xf] }
 0x2a0   :  { %v1558_v11 = vpop.f32.mrf.mxu1 }
 0x2a2   :  { %v1427_v54 = vpop.f32.mrf.mxu2  ;;  %v1472_v59 = vpop.f32.mrf.mxu3 }
 0x2a3   :  { %v3389_v51 = vadd.f32 %v1427_v54, %v1355_v36  ;;  %v1473_v62 = vadd.f32 %v1472_v59, %v1400_v8  ;;  %2216 = vmatmul.msk.bf16.gmra.mxu1 %vm1270_vm2, %v1230_v18  ;;  %v1360_v36 = vadd.f32 %v3274_v43, %v987_v60 }
 0x2a5   :  { %v1546_v0 = vadd.f32 %v1545_v33, %v1473_v62  ;;  %v1332_v33 = vadd.f32 %v3099_v14, %v3223_v2  ;;  %v2199_v62 = vor.u32 %v2323_v15, %v2198_v27 }
 0x2a7   :  { %v1605_v39 = vmax.f32 %v1546_v0, 0.0  ;;  %1514 = vmatmul.bf16.gmra.mxu3 %v2183_v55  ;;  %v1405_v8 = vadd.f32 %v3289_v37, %v1332_v33 }
 0x2a8   :  { %v1560_v3 = vpop.f32.mrf.mxu1 }
 0x2a9   :  { %v3397_v22 = vpack.c.bf16 %v1605_v39, %v1604_v40 }
 0x2aa   :  { %v3399_v23 = vpop.f32.mrf.mxu2  ;;  %v1475_v6 = vpop.f32.mrf.mxu3 }
 0x2ab   :  { %v1476_v20 = vadd.f32 %v1475_v6, %v3272_v53  ;;  %v1337_v6 = vadd.f32 %v3135_v31, %v3003_v47 }
 0x2ad   :  { %v1549_v28 = vadd.f32 %v1548_v35, %v1476_v20  ;;  %v1177_v20 = vunpack.c.l.b16 %v878_v50  ;;  %v1410_v33 = vadd.f32 %v3311_v29, %v1337_v6 }
 0x2af   :  { %v1606_v55 = vmax.f32 %v1549_v28, 0.0  ;;  %v1229_v15 = vpack.c.b16 %v1177_v20, %v1177_v20 }
 0x2b0   :  { %v1563_v2 = vpop.f32.mrf.mxu1 }
 0x2b2   :  { %v1432_v54 = vpop.f32.mrf.mxu2  ;;  %v1477_v53 = vpop.f32.mrf.mxu3 }
 0x2b3   :  { %v3412_v35 = vadd.f32 %v1432_v54, %v1360_v36  ;;  %v1478_v59 = vadd.f32 %v1477_v53, %v1405_v8 }
 0x2b5   :  { %v1551_v14 = vadd.f32 %v3352_v58, %v1478_v59 }
 0x2b7   :  { %v1607_v63 = vmax.f32 %v1551_v14, 0.0  ;;  %1519 = vmatmul.bf16.gmra.mxu3 %v2199_v62 }
 0x2b8   :  { %v1565_v39 = vpop.f32.mrf.mxu1 }
 0x2b9   :  { %v3415_v0 = vpack.c.bf16 %v1607_v63, %v1606_v55 }
 0x2ba   :  { %v3417_v18 = vpop.f32.mrf.mxu2  ;;  %v1480_v40 = vpop.f32.mrf.mxu3 }
 0x2bb   :  { %v1481_v43 = vadd.f32 %v1480_v40, %v3301_v5 }
 0x2bd   :  { %v1554_v37 = vadd.f32 %v1553_v9, %v1481_v43 }
 0x2bf   :  { %v1608_v54 = vmax.f32 %v1554_v37, 0.0 }
 0x2c0   :  { %v1568_v8 = vpop.f32.mrf.mxu1 }
 0x2c2   :  { %v1437_v58 = vpop.f32.mrf.mxu2  ;;  %v1482_v60 = vpop.f32.mrf.mxu3 }
 0x2c3   :  { %v3424_v28 = vadd.f32 %v1437_v58, %v3048_v38  ;;  %v1483_v27 = vadd.f32 %v1482_v60, %v1410_v33  ;;  %v1342_v38 = vadd.f32 %v3160_v46, %v2994_v7 }
 0x2c5   :  { %v1556_v36 = vadd.f32 %v1555_v57, %v1483_v27  ;;  %v1415_v59 = vadd.f32 %v3330_v49, %v1342_v38 }
 0x2c7   :  { %v1609_v53 = vmax.f32 %v1556_v36, 0.0  ;;  %1524 = vmatmul.bf16.gmra.mxu3 %v1229_v15 }
 0x2c8   :  { %v1570_v50 = vpop.f32.mrf.mxu1 }
 0x2c9   :  { %v3426_v5 = vpack.c.bf16 %v1609_v53, %v1608_v54 }
 0x2ca   :  { %v3428_v9 = vpop.f32.mrf.mxu2  ;;  %v1485_v47 = vpop.f32.mrf.mxu3 }
 0x2cb   :  { %v1486_v31 = vadd.f32 %v1485_v47, %v3321_v10  ;;  %v1372_v10 = vadd.f32 %v3078_v56, %v3036_v34 }
 0x2cd   :  { %v1559_v29 = vadd.f32 %v1558_v11, %v1486_v31 }
 0x2cf   :  { %v1610_v43 = vmax.f32 %v1559_v29, 0.0 }
 0x2d0   :  { %v1573_v40 = vpop.f32.mrf.mxu1 }
 0x2d2   :  { %v1442_v62 = vpop.f32.mrf.mxu2  ;;  %v1487_v57 = vpop.f32.mrf.mxu3 }
 0x2d3   :  { %v3435_v14 = vadd.f32 %v1442_v62, %v3066_v19  ;;  %v1488_v55 = vadd.f32 %v1487_v57, %v1415_v59  ;;  %v1347_v19 = vadd.f32 %v3189_v26, %v3064_v24  ;;  %v1352_v26 = vadd.f32 %v3225_v45, %v3012_v61 }
 0x2d4   :  { %v1357_v61 = vadd.f32 %v3260_v4, %v2975_v32 }
 0x2d5   :  { %v1561_v63 = vadd.f32 %v1560_v3, %v1488_v55  ;;  %v1420_v3 = vadd.f32 %v3349_v41, %v1347_v19  ;;  %v1425_v41 = vadd.f32 %v3375_v42, %v1352_v26 }
 0x2d7   :  { %v1611_v37 = vmax.f32 %v1561_v63, 0.0 }
 0x2d8   :  { %v1575_v33 = vpop.f32.mrf.mxu1 }
 0x2d9   :  { %v3439_v11 = vpack.c.bf16 %v1611_v37, %v1610_v43 }
 0x2da   :  { %v1444_v6 = vpop.f32.mrf.mxu2  ;;  %v1490_v20 = vpop.f32.mrf.mxu3 }
 0x2db   :  { %v3441_v7 = vadd.f32 %v1444_v6, %v1372_v10  ;;  %v1491_v46 = vadd.f32 %v1490_v20, %v3340_v12 }
 0x2dd   :  { %v1564_v49 = vadd.f32 %v1563_v2, %v1491_v46 }
 0x2df   :  { %v1612_v36 = vmax.f32 %v1564_v49, 0.0 }
 0x2e0   :  { %v1578_v15 = vpop.f32.mrf.mxu1 }
 0x2e2   :  { %v1447_v58 = vpop.f32.mrf.mxu2  ;;  %v1492_v60 = vpop.f32.mrf.mxu3 }
 0x2e3   :  { %v3448_v27 = vadd.f32 %v1447_v58, %v3082_v16  ;;  %v1493_v34 = vadd.f32 %v1492_v60, %v1420_v3  ;;  %v1380_v16 = vadd.f32 %v3094_v21, %v3076_v52  ;;  %v1430_v21 = vadd.f32 %v3399_v23, %v1357_v61  ;;  %v992_v60 = vpop.permute.xlu2 %991 }
 0x2e4   :  { %v1362_v32 = vadd.f32 %v3291_v44, %v992_v60 }
 0x2e5   :  { %v1566_v56 = vadd.f32 %v1565_v39, %v1493_v34 }
 0x2e6   :  { %v1435_v4 = vadd.f32 %v3417_v18, %v1362_v32  ;;  %v1367_v18 = vadd.f32 %v3060_v13, %v3394_v25 }
 0x2e7   :  { %v1613_v54 = vmax.f32 %v1566_v56, 0.0 }
 0x2e8   :  { %v1580_v24 = vpop.f32.mrf.mxu1 }
 0x2e9   :  { %v1632_v53 = vpack.c.bf16 %v1613_v54, %v1612_v36 }
 0x2ea   :  { %v3450_v47 = vpop.f32.mrf.mxu2  ;;  %v1495_v12 = vpop.f32.mrf.mxu3 }
 0x2eb   :  { %v1496_v2 = vadd.f32 %v1495_v12, %v3364_v30 }
 0x2ed   :  { %v1569_v31 = vadd.f32 %v1568_v8, %v1496_v2 }
 0x2ef   :  { %v1614_v55 = vmax.f32 %v1569_v31, 0.0 }
 0x2f0   :  { %v1583_v57 = vpop.f32.mrf.mxu1 }
 0x2f2   :  { %v1452_v39 = vpop.f32.mrf.mxu2  ;;  %v1497_v29 = vpop.f32.mrf.mxu3 }
 0x2f3   :  { %v3458_v38 = vadd.f32 %v1452_v39, %v1380_v16  ;;  %v1498_v59 = vadd.f32 %v1497_v29, %v1425_v41 }
 0x2f5   :  { %v1571_v62 = vadd.f32 %v1570_v50, %v1498_v59  ;;  %v2227_v59 = vld [vmem:[%s3536_s5 + $0x10] sm:$0xf] }
 0x2f7   :  { %v1615_v63 = vmax.f32 %v1571_v62, 0.0  ;;  %v2327_v62 = vld [vmem:[%s3536_s5 + $0x14] sm:$0xf0] }
 0x2f8   :  { %v1585_v37 = vpop.f32.mrf.mxu1 }
 0x2f9   :  { %v1633_v30 = vpack.c.bf16 %v1615_v63, %v1614_v55 }
 0x2fa   :  { %v1500_v8 = vpop.f32.mrf.mxu3  ;;  %v1454_v43 = vpop.f32.mrf.mxu2 }
 0x2fb   :  { %v1501_v52 = vadd.f32 %v1500_v8, %v3389_v51 }
 0x2fd   :  { %v1574_v42 = vadd.f32 %v1573_v40, %v1501_v52 }
 0x2ff   :  { %v1616_v50 = vmax.f32 %v1574_v42, 0.0 }
 0x300   :  { %v1588_v20 = vpop.f32.mrf.mxu1 }
 0x302   :  { %v1502_v45 = vpop.f32.mrf.mxu3 }
 0x303   :  { %v1503_v10 = vadd.f32 %v1502_v45, %v1430_v21  ;;  %v2235_v21 = vld [vmem:[%s3536_s5 + $0x20] sm:$0xf]  ;;  %v2329_v45 = vld [vmem:[%s3536_s5 + $0x24] sm:$0xf0] }
 0x305   :  { %v1576_v6 = vadd.f32 %v1575_v33, %v1503_v10  ;;  %v2236_v10 = vor.u32 %v2329_v45, %v2235_v21 }
 0x307   :  { %v1617_v46 = vmax.f32 %v1576_v6, 0.0 }
 0x308   :  { %v1590_v34 = vpop.f32.mrf.mxu1 }
 0x309   :  { %v1634_v49 = vpack.c.bf16 %v1617_v46, %v1616_v50  ;;  %v1646_v46 = vld [vmem:[%s3536_s5 + $0x30] sm:$0x11] }
 0x30a   :  { %v1505_v19 = vpop.f32.mrf.mxu3 }
 0x30b   :  { %v1506_v3 = vadd.f32 %v1505_v19, %v3412_v35  ;;  %1739 = vmatpush.bf16.msra.mxu2 %v1634_v49 }
 0x30d   :  { %v1579_v58 = vadd.f32 %v1578_v15, %v1506_v3  ;;  %v1708_v3 = vunpack.c.l.b16 %v1646_v46 }
 0x30f   :  { %1740 = vmatpush.bf16.msra.mxu2 %v1633_v30  ;;  %v1618_v56 = vmax.f32 %v1579_v58, 0.0  ;;  %v1716_v60 = vpack.c.b16 %v1708_v3, %v1708_v3 }
 0x310   :  { %v1593_v33 = vpop.f32.mrf.mxu1 }
 0x312   :  { %v1507_v51 = vpop.f32.mrf.mxu3 }
 0x313   :  { %v1508_v23 = vadd.f32 %v1507_v51, %v1435_v4  ;;  %1741 = vmatpush.bf16.msra.mxu2 %v1632_v53  ;;  %v1440_v53 = vadd.f32 %v3428_v9, %v1367_v18  ;;  %v2326_v4 = vld [vmem:[%s3536_s5 + $0x14] sm:$0xf]  ;;  %v2229_v51 = vld [vmem:[%s3536_s5 + $0x18] sm:$0xf0] }
 0x315   :  { %v1581_v40 = vadd.f32 %v1580_v24, %v1508_v23  ;;  %v2232_v23 = vor.u32 %v2326_v4, %v2229_v51 }
 0x317   :  { %v1619_v36 = vmax.f32 %v1581_v40, 0.0  ;;  %1742 = vmatpush.bf16.msra.mxu2 %v3439_v11  ;;  %v2219_v11 = vld [vmem:[%s3536_s5] sm:$0xf]  ;;  %v2328_v40 = vld [vmem:[%s3536_s5 + $0x24] sm:$0xf] }
 0x318   :  { %v1595_v12 = vpop.f32.mrf.mxu1 }
 0x319   :  { %v3468_v54 = vpack.c.bf16 %v1619_v36, %v1618_v56  ;;  %v1709_v36 = vunpack.c.h.b16 %v1646_v46 }
 0x31a   :  { %v1510_v35 = vpop.f32.mrf.mxu3 }
 0x31b   :  { %v1511_v15 = vadd.f32 %v1510_v35, %v3424_v28  ;;  %1743 = vmatpush.bf16.msra.mxu2 %v3426_v5  ;;  %v2325_v28 = vld [vmem:[%s3536_s5 + $0x4] sm:$0xf0] }
 0x31c   :  { %v2220_v24 = vor.u32 %v2325_v28, %v2219_v11  ;;  %v1682_v11 = vpop.permute.xlu2 %1681 }
 0x31d   :  { %v1584_v44 = vadd.f32 %v1583_v57, %v1511_v15 }
 0x31f   :  { %1744 = vmatpush.bf16.msra.mxu2 %v3415_v0  ;;  %v1620_v13 = vmax.f32 %v1584_v44, 0.0 }
 0x320   :  { %v1598_v26 = vpop.f32.mrf.mxu1 }
 0x322   :  { %v1512_v2 = vpop.f32.mrf.mxu3 }
 0x323   :  { %v1513_v31 = vadd.f32 %v1512_v2, %v1440_v53  ;;  %1745 = vmatpush.bf16.msra.mxu2 %v3397_v22  ;;  %v1687_v2 = vpop.permute.xlu0 %1686 }
 0x325   :  { %v1586_v5 = vadd.f32 %v1585_v37, %v1513_v31 }
 0x327   :  { %v1621_v25 = vmax.f32 %v1586_v5, 0.0  ;;  %1746 = vmatpush.bf16.msra.mxu2 %v3373_v48  ;;  %v2228_v48 = vor.u32 %v2327_v62, %v2227_v59 }
 0x328   :  { %v1600_v41 = vpop.f32.mrf.mxu1 }
 0x329   :  { %v1636_v0 = vpack.c.bf16 %v1621_v25, %v1620_v13 }
 0x32a   :  { %v1515_v9 = vpop.f32.mrf.mxu3  ;;  %1747 = vmatmul.bf16.vlgmr.msra.gmra.mxu2 %v2220_v24 }
 0x32b   :  { %v1516_v22 = vadd.f32 %v1515_v9, %v3435_v14  ;;  %v1377_v14 = vadd.f32 %v3090_v17, %v3058_v1  ;;  %v1667_v5 = vpop.permute.xlu0 %1666 }
 0x32d   :  { %v1589_v16 = vadd.f32 %v1588_v20, %v1516_v22  ;;  %v1450_v43 = vadd.f32 %v3450_v47, %v1377_v14 }
 0x32f   :  { %v1622_v55 = vmax.f32 %v1589_v16, 0.0 }
 0x332   :  { %v1517_v39 = vpop.f32.mrf.mxu3 }
 0x333   :  { %v1518_v29 = vadd.f32 %v1517_v39, %v3441_v7  ;;  %v1662_v25 = vpop.permute.xlu0 %1661 }
 0x335   :  { %v1591_v57 = vadd.f32 %v1590_v34, %v1518_v29  ;;  %v2221_v34 = vld [vmem:[%s3536_s5 + $0x8] sm:$0xf0]  ;;  %v1677_v29 = vpop.permute.xlu1 %1676 }
 0x337   :  { %v1623_v63 = vmax.f32 %v1591_v57, 0.0 }
 0x339   :  { %v1637_v30 = vpack.c.bf16 %v1623_v63, %v1622_v55 }
 0x33a   :  { %v1520_v8 = vpop.f32.mrf.mxu3  ;;  %1752 = vmatmul.bf16.gmra.mxu2 %v2228_v48 }
 0x33b   :  { %v1521_v7 = vadd.f32 %v1520_v8, %v3448_v27 }
 0x33d   :  { %v1594_v61 = vadd.f32 %v1593_v33, %v1521_v7  ;;  %v2237_v33 = vld [vmem:[%s3536_s5 + $0x28] sm:$0xf0]  ;;  %v1672_v48 = vpop.permute.xlu1 %1671 }
 0x33e   :  { %v2240_v56 = vor.u32 %v2328_v40, %v2237_v33 }
 0x33f   :  { %v1624_v6 = vmax.f32 %v1594_v61, 0.0 }
 0x342   :  { %v1522_v37 = vpop.f32.mrf.mxu3 }
 0x343   :  { %v1523_v52 = vadd.f32 %v1522_v37, %v1450_v43 }
 0x345   :  { %v1596_v42 = vadd.f32 %v1595_v12, %v1523_v52  ;;  %v1811_v3 = vpop.permute.xlu1 %1810 }
 0x347   :  { %v1625_v20 = vmax.f32 %v1596_v42, 0.0 }
 0x349   :  { %v1638_v1 = vpack.c.bf16 %v1625_v20, %v1624_v6 }
 0x34a   :  { %v1525_v17 = vpop.f32.mrf.mxu3  ;;  %1757 = vmatmul.bf16.gmra.mxu2 %v2236_v10 }
 0x34b   :  { %v1526_v27 = vadd.f32 %v1525_v17, %v3458_v38  ;;  %v2324_v38 = vld [vmem:[%s3536_s5 + $0x4] sm:$0xf] }
 0x34c   :  { %v2224_v32 = vor.u32 %v2324_v38, %v2221_v34 }
 0x34d   :  { %v1599_v47 = vadd.f32 %v1598_v26, %v1526_v27  ;;  %v1657_v26 = vpop.permute.xlu2 %1656 }
 0x34f   :  { %v1626_v50 = vmax.f32 %v1599_v47, 0.0 }
 0x351   :  { %v1639_v49 = vpack.c.bf16 %v1626_v50, %v1626_v50 }
 0x352   :  { %v1527_v19 = vpop.f32.mrf.mxu3 }
 0x353   :  { %v1737_v58 = vsel %vm1735_vm3, %v1639_v49, 0  ;;  %v1806_v19 = vld [vmem:[%s3538_s7] sm:$0x3]  ;;  %s1860_s7 = sshll.u32 %s2378_s14, 4  ;;  %s1861_s7 = int_to_ptr.vmem [resolvable:$true] %s1860_s7 }
 0x354   :  { %1770 = vmatpush.bf16.msra.mxu3 %v1737_v58 }
 0x358   :  { %1771 = vmatpush.bf16.msra.mxu3 %v1638_v1 }
 0x35a   :  { %1762 = vmatmul.bf16.gmra.mxu2 %v1716_v60 }
 0x35c   :  { %1772 = vmatpush.bf16.msra.mxu3 %v1637_v30 }
 0x360   :  { %1773 = vmatpush.bf16.msra.mxu3 %v1636_v0 }
 0x364   :  { %1774 = vmatpush.bf16.msra.mxu3 %v3468_v54  ;;  %v1717_v54 = vpack.c.b16 %v1709_v36, %v1709_v36 }
 0x367   :  { %2241 = vmatmul.msk.bf16.vlgmr.msra.gmra.mxu3 %vm1722_vm4, %v2224_v32 }
 0x377   :  { %2242 = vmatmul.msk.bf16.gmra.mxu3 %vm1722_vm4, %v2232_v23 }
 0x387   :  { %2243 = vmatmul.msk.bf16.gmra.mxu3 %vm1722_vm4, %v2240_v56 }
 0x397   :  { %2244 = vmatmul.msk.bf16.gmra.mxu3 %vm1722_vm4, %v1717_v54 }
 0x3ad   :  { %v1748_v35 = vpop.f32.mrf.mxu2 }
 0x3ae   :  { %v1749_v13 = vadd.f32 %v1748_v35, %v1657_v26 }
 0x3b5   :  { %v1750_v15 = vpop.f32.mrf.mxu2 }
 0x3b6   :  { %v1751_v0 = vadd.f32 %v1750_v15, %v1662_v25 }
 0x3bd   :  { %v1753_v44 = vpop.f32.mrf.mxu2 }
 0x3be   :  { %v1754_v57 = vadd.f32 %v1753_v44, %v1667_v5 }
 0x3c5   :  { %v1755_v12 = vpop.f32.mrf.mxu2 }
 0x3c6   :  { %v1756_v55 = vadd.f32 %v1755_v12, %v1672_v48 }
 0x3cd   :  { %v1758_v18 = vpop.f32.mrf.mxu2 }
 0x3ce   :  { %v1759_v61 = vadd.f32 %v1758_v18, %v1677_v29 }
 0x3d5   :  { %v1760_v53 = vpop.f32.mrf.mxu2 }
 0x3d6   :  { %v1761_v52 = vadd.f32 %v1760_v53, %v1682_v11 }
 0x3dd   :  { %v1763_v31 = vpop.f32.mrf.mxu2 }
 0x3de   :  { %v1764_v1 = vadd.f32 %v1763_v31, %v1687_v2 }
 0x3e5   :  { %v1765_v28 = vpop.f32.mrf.mxu2 }
 0x3ea   :  { %v1776_v24 = vpop.f32.mrf.mxu3 }
 0x3eb   :  { %v1777_v9 = vadd.f32 %v1776_v24, %v1749_v13 }
 0x3ed   :  { %v1795_v41 = vmax.f32 %v1777_v9, 0.0 }
 0x3f2   :  { %v1778_v22 = vpop.f32.mrf.mxu3 }
 0x3f3   :  { %v1779_v16 = vadd.f32 %v1778_v22, %v1751_v0 }
 0x3f5   :  { %v1796_v39 = vmax.f32 %v1779_v16, 0.0 }
 0x3f7   :  { %v1802_v59 = vpack.c.bf16 %v1796_v39, %v1795_v41 }
 0x3fa   :  { %v1781_v62 = vpop.f32.mrf.mxu3 }
 0x3fb   :  { %v1782_v63 = vadd.f32 %v1781_v62, %v1754_v57 }
 0x3fd   :  { %v1797_v14 = vmax.f32 %v1782_v63, 0.0 }
 0x402   :  { %v1783_v30 = vpop.f32.mrf.mxu3 }
 0x403   :  { %v1784_v8 = vadd.f32 %v1783_v30, %v1756_v55 }
 0x405   :  { %v1798_v7 = vmax.f32 %v1784_v8, 0.0 }
 0x407   :  { %v1803_v43 = vpack.c.bf16 %v1798_v7, %v1797_v14 }
 0x40a   :  { %v1786_v37 = vpop.f32.mrf.mxu3 }
 0x40b   :  { %v1787_v21 = vadd.f32 %v1786_v37, %v1759_v61 }
 0x40d   :  { %v1799_v10 = vmax.f32 %v1787_v21, 0.0 }
 0x412   :  { %v1788_v45 = vpop.f32.mrf.mxu3 }
 0x413   :  { %v1789_v42 = vadd.f32 %v1788_v45, %v1761_v52 }
 0x415   :  { %v1800_v6 = vmax.f32 %v1789_v42, 0.0 }
 0x417   :  { %v1804_v20 = vpack.c.bf16 %v1800_v6, %v1799_v10 }
 0x41a   :  { %v1791_v17 = vpop.f32.mrf.mxu3 }
 0x41b   :  { %v1792_v27 = vadd.f32 %v1791_v17, %v1764_v1 }
 0x41d   :  { %v1801_v47 = vmax.f32 %v1792_v27, 0.0 }
 0x41f   :  { %v1805_v50 = vpack.c.bf16 %v1801_v47, %v1801_v47 }
 0x421   :  { %v1819_v46 = vsel %vm1817_vm5, %v1805_v50, 0 }
 0x422   :  { %1825 = vmatpush.bf16.msrb.mxu2 %v1819_v46  ;;  %v1793_v49 = vpop.f32.mrf.mxu3 }
 0x426   :  { %1826 = vmatpush.bf16.msrb.mxu2 %v1804_v20 }
 0x42a   :  { %1827 = vmatpush.bf16.msrb.mxu2 %v1803_v43 }
 0x42e   :  { %1828 = vmatpush.bf16.msrb.mxu2 %v1802_v59 }
 0x431   :  { %2245 = vmatmul.msk.bf16.vlgmr.msrb.gmra.mxu2 %vm1813_vm6, %v1806_v19 }
 0x4b4   :  { %v1830_v58 = vpop.f32.mrf.mxu2 }
 0x4b5   :  { %v1831_v60 = vadd.f32 %v1830_v58, %v1811_v3 }
 0x4b7   :  { %v2246_v38 = vmul.f32 -1.442695, %v1831_v60 }
 0x4b9   :  { %2347 = vpow2.f32 %v2246_v38 }
 0x4bc   :  { %v1832_v34 = vpop.f32.mrf.mxu2 }
 0x4bf   :  { %v2348_v32 = vpop.eup %2347 }
 0x4c0   :  { %v1837_v4 = vadd.f32 1.0, %v2348_v32 }
 0x4c2   :  { %2349 = vrcp.f32 %v1837_v4  ;;  %v1849_v33 = vand.u32 2147483648, %v1837_v4  ;;  %v1847_v36 = vand.u32 2147483647, %v1837_v4  ;;  %vm1843_vm8 = vweird.f32 %v1837_v4 }
 0x4c4   :  { %v1850_v35 = vor.u32 1.1754944e-38, %v1849_v33  ;;  %vm1848_vm11 = vcmp.eq.f32.partialorder %v1847_v36, 8.507059e+37 }
 0x4c8   :  { %v2350_v51 = vpop.eup %2349 }
 0x4c9   :  { %v1839_v23 = vmul.f32 %v2350_v51, %v1837_v4  ;;  %vm1844_vm7 = vweird.f32 %v2350_v51 }
 0x4ca   :  { %vm1845_vm9 = vmor %vm1843_vm8, %vm1844_vm7 }
 0x4cb   :  { %v1840_v40 = vsub.f32 1.0, %v1839_v23 }
 0x4cd   :  { %v1841_v56 = vmul.f32 %v2350_v51, %v1840_v40 }
 0x4cf   :  { %v1842_v54 = vadd.f32 %v2350_v51, %v1841_v56 }
 0x4d1   :  { %v1846_v15 = vsel %vm1845_vm9, %v2350_v51, %v1842_v54 }
 0x4d2   :  { %v1851_v44 = vsel %vm1848_vm11, %v1850_v35, %v1846_v15 }
 0x4d3   :  { %1854 = vst.msk [vmem:[#allocation2] sm:$0xf] %vm1853_vm10, %v1851_v44 }
 0x4d4   :  { %1865 = dma.vmem_to_hbm [thread:$0]  %s1861_s7, 64, %s1863_s16, [#allocation3]  }
 0x4d5   :  { %2375 = dma.done.wait [#allocation3], 64  }
 0x4d6   :  { %2376 = vsyncadd [#allocation3], 4294967232 }
 0x4d7   :  { %1870 = vsyncpa [#allocation3], 1 }

</bundles_post_ra>
